<compile_context>
chip_gen: v5e
topology: v5e:2x2
jax: 0.10.0
libtpu: 0.0.40
codegen_flags: <defaults>
</compile_context>

<pallas_src>
import functools

import jax
import jax.numpy as jnp
from jax.experimental import pallas as pl
from jax.experimental.pallas import tpu as pltpu


def _round_up(x, m):
    return (x + m - 1) // m * m


def _pad2(x, rows, cols):
    r, c = x.shape
    return jnp.pad(x, ((0, rows - r), (0, cols - c)))


def _gcn_fused_kernel(h_ref, ef_ref, src_ref, dst_ref,
                      wm_ref, bm_ref, wa_ref, ba_ref,
                      out_ref, s_scr, a_scr, *, num_layers):
    """All GNN layers + final feature-group sum for one feature group f.

    h_ref  : [1, Np, Dp] bf16  node features of group f (zero-padded)
    ef_ref : [1, Ep, Dp] bf16  edge features of group f
    src_ref: [Ep, 1] int32     source node id per edge (-1 for padded edges)
    dst_ref: [1, Ep] int32     destination node id per edge (-1 for padded)
    wm_ref : [L, 2*Dp, Dp] bf16  fused W_msg   (rows 0:Dp node part, Dp:2Dp edge part)
    bm_ref : [L, 1, Dp] f32
    wa_ref : [L, 2*Dp, Dp] bf16  fused W_apply (rows 0:Dp node part, Dp:2Dp neigh part)
    ba_ref : [L, 1, Dp] f32
    out_ref: [Np, Dp] f32      accumulator over feature groups (VMEM-resident)
    s_scr  : [Ep, Np] bf16     gather one-hot scratch  (S[e, n] = src[e] == n)
    a_scr  : [Np, Ep] bf16     scatter-sum one-hot scratch (A[n, e] = dst[e] == n)
    """
    f = pl.program_id(0)
    ep, npad = s_scr.shape

    # Build the one-hot gather/scatter matrices once; padded edges (id == -1)
    # yield all-zero rows of S / columns of A, which keeps padding neutral.
    @pl.when(f == 0)
    def _():
        node_iota = jax.lax.broadcasted_iota(jnp.int32, (ep, npad), 1)
        s_scr[...] = (node_iota == src_ref[...]).astype(jnp.bfloat16)
        node_iota_t = jax.lax.broadcasted_iota(jnp.int32, (npad, ep), 0)
        a_scr[...] = (node_iota_t == dst_ref[...]).astype(jnp.bfloat16)

    S = s_scr[...]                      # [Ep, Np] bf16 (reused by every layer)
    A = a_scr[...]                      # [Np, Ep] bf16
    ef = ef_ref[0]                      # [Ep, Dp] bf16 (constant across layers)

    def layer(li, h):
        # gather source-node features onto edges: h_src[e] = h[src[e]]
        h_src = jnp.dot(S, h.astype(jnp.bfloat16),
                        preferred_element_type=jnp.float32)
        # message = relu([h_src || ef] @ W_msg + b_msg)   (fused K = 2*Dp matmul)
        msg_in = jnp.concatenate([h_src.astype(jnp.bfloat16), ef], axis=-1)
        m = jnp.dot(msg_in, wm_ref[li], preferred_element_type=jnp.float32)
        m = jnp.maximum(m + bm_ref[li], 0.0)
        # scatter-sum messages onto destination nodes
        h_neigh = jnp.dot(A, m.astype(jnp.bfloat16),
                          preferred_element_type=jnp.float32)
        # apply = relu([h || h_neigh] @ W_apply + b_apply)
        app_in = jnp.concatenate([h.astype(jnp.bfloat16),
                                  h_neigh.astype(jnp.bfloat16)], axis=-1)
        h_new = jnp.dot(app_in, wa_ref[li], preferred_element_type=jnp.float32)
        return jnp.maximum(h_new + ba_ref[li], 0.0)

    h0 = h_ref[0].astype(jnp.float32)   # [Np, Dp] f32 carry
    h = jax.lax.fori_loop(0, num_layers, layer, h0, unroll=True)

    # accumulate the final-layer output over the feature-group grid axis
    # (this fuses the trailing nfeats.sum(1))
    @pl.when(f == 0)
    def _():
        out_ref[...] = jnp.zeros_like(out_ref)

    out_ref[...] += h


def prepare_gcn_params(params, dp):
    """Split / transpose / zero-pad / fuse torch-style weights ONCE (hoisted)."""
    wm, bm, wa, ba = [], [], [], []
    for (W_msg, b_msg, W_apply, b_apply) in params:
        dout = W_apply.shape[0]
        din = W_apply.shape[1] - dout            # W_apply: [dout, din + dout]
        W_msg = jnp.asarray(W_msg, jnp.float32)
        W_apply = jnp.asarray(W_apply, jnp.float32)
        # nn.Linear stores W as [out, in]; split along the concat axis,
        # transpose so the kernel computes x @ W^T, pad to [dp, dp], then
        # stack the two halves into one fused [2*dp, dp] bf16 weight (K=2*dp).
        wm_node = _pad2(W_msg[:, :din].T, dp, dp)
        wm_edge = _pad2(W_msg[:, din:].T, dp, dp)
        wm.append(jnp.concatenate([wm_node, wm_edge], axis=0).astype(jnp.bfloat16))
        wa_node = _pad2(W_apply[:, :din].T, dp, dp)
        wa_ngh = _pad2(W_apply[:, din:].T, dp, dp)
        wa.append(jnp.concatenate([wa_node, wa_ngh], axis=0).astype(jnp.bfloat16))
        bm.append(_pad2(jnp.asarray(b_msg, jnp.float32)[None, :], 1, dp))
        ba.append(_pad2(jnp.asarray(b_apply, jnp.float32)[None, :], 1, dp))
    return jnp.stack(wm), jnp.stack(bm), jnp.stack(wa), jnp.stack(ba)


def _vmem_cap_bytes():
    """Physical VMEM per core (90% usable); fall back to v7x's 64 MiB."""
    try:
        return int(pltpu.get_tpu_info().vmem_capacity_bytes * 0.9)
    except Exception:
        return 56 * 1024 * 1024


def _vmem_estimate_bytes(Np, Ep, dp, L):
    """Rough per-core VMEM footprint of the fused kernel."""
    b = 0
    b += 2 * Np * dp * 2                      # h block (bf16, double-buffered)
    b += 2 * Ep * dp * 2                      # ef block (bf16, double-buffered)
    b += 2 * 2 * Ep * 4                       # src / dst int32
    b += 2 * 2 * L * 2 * dp * dp * 2          # wm + wa (bf16)
    b += 2 * 2 * L * dp * 4                   # bm + ba (f32)
    b += 2 * Np * dp * 4                      # resident f32 output accumulator
    b += 2 * Ep * Np * 2                      # S + A bf16 scratch
    # in-kernel temporaries (f32 h / h_src / m / h_neigh + bf16 concat buffers)
    b += (2 * Np * dp + 2 * Ep * dp) * 4 + (2 * Ep * dp + 2 * Np * dp) * 2
    return b


@functools.partial(jax.jit, static_argnames=("num_nodes",))
def gcn_forward(src, dst, nfeats, efeats, params, *, num_nodes):
    """Full fused GCN forward.

    src, dst : [E] int32 edge endpoints
    nfeats   : [N, F, ndim_in] float32
    efeats   : [E, F, edim]    float32
    params   : list of (W_msg, b_msg, W_apply, b_apply) per layer
    returns  : [N, ndim_out]   (== nfeats.sum(1) after the last layer)
    """
    N = num_nodes
    E = src.shape[0]
    Fgrp = nfeats.shape[1]
    ndim_in = nfeats.shape[2]
    edim = efeats.shape[2]
    layer_douts = [p[3].shape[0] for p in params]
    ndim_out = layer_douts[-1]
    L = len(params)

    # shared lane-dense feature width for every layer, and aligned row counts
    dp = _round_up(max([ndim_in, edim] + layer_douts), 128)
    Np = _round_up(N, 128)
    Ep = _round_up(E, 128)

    # padded edge endpoints; pad value -1 => zero rows of S / columns of A
    src_col = jnp.pad(jnp.asarray(src, jnp.int32), (0, Ep - E),
                      constant_values=-1)[:, None]                  # [Ep, 1]
    dst_row = jnp.pad(jnp.asarray(dst, jnp.int32), (0, Ep - E),
                      constant_values=-1)[None, :]                  # [1, Ep]

    # features: feature-group-major [F, rows, dp], zero-padded, streamed as bf16
    h = jnp.transpose(jnp.asarray(nfeats, jnp.float32), (1, 0, 2))
    h = jnp.pad(h, ((0, 0), (0, Np - N), (0, dp - ndim_in))).astype(jnp.bfloat16)
    ef = jnp.transpose(jnp.asarray(efeats, jnp.float32), (1, 0, 2))
    ef = jnp.pad(ef, ((0, 0), (0, Ep - E), (0, dp - edim))).astype(jnp.bfloat16)

    wm, bm, wa, ba = prepare_gcn_params(params, dp)

    est = _vmem_estimate_bytes(Np, Ep, dp, L)
    vmem_limit = int(min(max(2 * est + (8 << 20), 32 << 20), _vmem_cap_bytes()))

    const2 = lambda f: (0, 0)
    const3 = lambda f: (0, 0, 0)

    out = pl.pallas_call(
        functools.partial(_gcn_fused_kernel, num_layers=L),
        out_shape=jax.ShapeDtypeStruct((Np, dp), jnp.float32),
        grid=(Fgrp,),
        in_specs=[
            pl.BlockSpec((1, Np, dp), lambda f: (f, 0, 0)),   # h   (per group)
            pl.BlockSpec((1, Ep, dp), lambda f: (f, 0, 0)),   # ef  (per group)
            pl.BlockSpec((Ep, 1), const2),                    # src ids (resident)
            pl.BlockSpec((1, Ep), const2),                    # dst ids (resident)
            pl.BlockSpec((L, 2 * dp, dp), const3),            # fused W_msg
            pl.BlockSpec((L, 1, dp), const3),                 # b_msg
            pl.BlockSpec((L, 2 * dp, dp), const3),            # fused W_apply
            pl.BlockSpec((L, 1, dp), const3),                 # b_apply
        ],
        out_specs=pl.BlockSpec((Np, dp), const2),             # resident accumulator
        scratch_shapes=[
            pltpu.VMEM((Ep, Np), jnp.bfloat16),               # S (built in-kernel)
            pltpu.VMEM((Np, Ep), jnp.bfloat16),               # A (built in-kernel)
        ],
        compiler_params=pltpu.CompilerParams(
            dimension_semantics=("arbitrary",),               # reduction over F
            vmem_limit_bytes=vmem_limit),
    )(h, ef, src_col, dst_row, wm, bm, wa, ba)

    return out[:N, :ndim_out]


def gcn_reference(src, dst, num_nodes, nfeats, efeats, params):
    """Pure-JAX f32 reference with identical semantics (for verification)."""
    h = jnp.asarray(nfeats, jnp.float32)
    ef = jnp.asarray(efeats, jnp.float32)
    for (W_msg, b_msg, W_apply, b_apply) in params:
        h_src = h[src]                                                # [E, F, Din]
        m = jax.nn.relu(jnp.concatenate([h_src, ef], axis=2) @ W_msg.T + b_msg)
        h_neigh = jax.ops.segment_sum(m, dst, num_segments=num_nodes)
        h = jax.nn.relu(jnp.concatenate([h, h_neigh], axis=2) @ W_apply.T + b_apply)
    return h.sum(axis=1)


def _init_linear(key, out_dim, in_dim):
    """Deterministic nn.Linear-style init: U(-1/sqrt(fan_in), 1/sqrt(fan_in))."""
    kw, kb = jax.random.split(key)
    bound = 1.0 / jnp.sqrt(jnp.float32(in_dim))
    W = jax.random.uniform(kw, (out_dim, in_dim), jnp.float32, -bound, bound)
    b = jax.random.uniform(kb, (out_dim,), jnp.float32, -bound, bound)
    return W, b


def init_gcn_params(key, ndim_in, ndim_out, edim):
    layer_dims = [(ndim_in, 50), (50, 25), (25, ndim_out)]
    params = []
    for li, (din, dout) in enumerate(layer_dims):
        k_msg, k_apply, key = jax.random.split(jax.random.fold_in(key, li), 3)
        W_msg, b_msg = _init_linear(k_msg, dout, din + edim)
        W_apply, b_apply = _init_linear(k_apply, dout, din + dout)
        params.append((W_msg, b_msg, W_apply, b_apply))
    return params


if __name__ == "__main__":
    import numpy as np

    key = jax.random.PRNGKey(0)

    # Small synthetic graph + features.
    N = 12          # nodes
    E = 24          # edges
    Fgrp = 2        # middle feature-group dim (torch code typically uses 1)
    ndim_in = 16
    edim = 8
    ndim_out = 10

    k_src, k_dst, k_nf, k_ef, k_par = jax.random.split(key, 5)
    src = jax.random.randint(k_src, (E,), 0, N, dtype=jnp.int32)
    dst = jax.random.randint(k_dst, (E,), 0, N, dtype=jnp.int32)
    nfeats = jax.random.normal(k_nf, (N, Fgrp, ndim_in), jnp.float32)
    efeats = jax.random.normal(k_ef, (E, Fgrp, edim), jnp.float32)

    params = init_gcn_params(k_par, ndim_in, ndim_out, edim)

    out = gcn_forward(src, dst, nfeats, efeats, params, num_nodes=N)
    out = jax.block_until_ready(out)
    assert out.shape == (N, ndim_out), out.shape

    ref = gcn_reference(src, dst, N, nfeats, efeats, params)
    ref = jax.block_until_ready(ref)
    np.testing.assert_allclose(np.asarray(out), np.asarray(ref),
                               rtol=5e-2, atol=5e-2)
    print("KERNEL_OK")
</pallas_src>

<mosaic_0001>
module attributes {stable_mosaic.version = 11 : i64} {
  func.func @_gcn_fused_kernel(%arg0: i32, %arg1: memref<1x128x128xbf16, #tpu.memory_space<vmem>>, %arg2: memref<1x128x128xbf16, #tpu.memory_space<vmem>>, %arg3: memref<128x1xi32, #tpu.memory_space<vmem>>, %arg4: memref<1x128xi32, #tpu.memory_space<vmem>>, %arg5: memref<3x256x128xbf16, #tpu.memory_space<vmem>>, %arg6: memref<3x1x128xf32, #tpu.memory_space<vmem>>, %arg7: memref<3x256x128xbf16, #tpu.memory_space<vmem>>, %arg8: memref<3x1x128xf32, #tpu.memory_space<vmem>>, %arg9: memref<128x128xf32, #tpu.memory_space<vmem>>, %arg10: memref<128x128xbf16, #tpu.memory_space<vmem>>, %arg11: memref<128x128xbf16, #tpu.memory_space<vmem>>) attributes {dimension_semantics = [#tpu.dimension_semantics<arbitrary>], iteration_bounds = array<i64: 2>, scalar_prefetch = 0 : i64, scratch_operands = 2 : i64, tpu.core_type = #tpu.core_type<tc>, window_params = [{transform_indices = @transform_0, window_bounds = array<i64: 1, 128, 128>}, {transform_indices = @transform_1, window_bounds = array<i64: 1, 128, 128>}, {pipeline_mode = #tpu.pipeline_mode<synchronous>, transform_indices = @transform_2, window_bounds = array<i64: 128, 1>}, {pipeline_mode = #tpu.pipeline_mode<synchronous>, transform_indices = @transform_3, window_bounds = array<i64: 1, 128>}, {pipeline_mode = #tpu.pipeline_mode<synchronous>, transform_indices = @transform_4, window_bounds = array<i64: 3, 256, 128>}, {pipeline_mode = #tpu.pipeline_mode<synchronous>, transform_indices = @transform_5, window_bounds = array<i64: 3, 1, 128>}, {pipeline_mode = #tpu.pipeline_mode<synchronous>, transform_indices = @transform_6, window_bounds = array<i64: 3, 256, 128>}, {pipeline_mode = #tpu.pipeline_mode<synchronous>, transform_indices = @transform_7, window_bounds = array<i64: 3, 1, 128>}, {pipeline_mode = #tpu.pipeline_mode<synchronous>, transform_indices = @transform_8, window_bounds = array<i64: 128, 128>}]} {
    %c0_i32 = arith.constant 0 : i32
    %0 = arith.cmpi eq, %arg0, %c0_i32 : i32
    %1 = arith.extui %0 : i1 to i32
    %c0_i32_0 = arith.constant 0 : i32
    %2 = arith.cmpi ne, %1, %c0_i32_0 : i32
    scf.if %2 {
      %109 = tpu.iota {dimensions = array<i32: 1>} : vector<128x128xi32>
      %c0_58 = arith.constant 0 : index
      %c0_59 = arith.constant 0 : index
      %110 = vector.load %arg3[%c0_58, %c0_59] : memref<128x1xi32, #tpu.memory_space<vmem>>, vector<128x1xi32>
      %111 = vector.broadcast %110 : vector<128x1xi32> to vector<128x128xi32>
      %112 = arith.cmpi eq, %109, %111 : vector<128x128xi32>
      %113 = arith.extui %112 : vector<128x128xi1> to vector<128x128xi32>
      %114 = arith.sitofp %113 : vector<128x128xi32> to vector<128x128xf32>
      %115 = arith.truncf %114 : vector<128x128xf32> to vector<128x128xbf16>
      %c0_60 = arith.constant 0 : index
      %c0_61 = arith.constant 0 : index
      %116 = vector.load %arg10[%c0_60, %c0_61] : memref<128x128xbf16, #tpu.memory_space<vmem>>, vector<128x128xbf16>
      tpu.vector_store %arg10[%c0_60, %c0_61], %115 {strides = array<i32>} : memref<128x128xbf16, #tpu.memory_space<vmem>>, vector<128x128xbf16>,
      %117 = tpu.iota {dimensions = array<i32: 0>} : vector<128x128xi32>
      %c0_62 = arith.constant 0 : index
      %c0_63 = arith.constant 0 : index
      %118 = vector.load %arg4[%c0_62, %c0_63] : memref<1x128xi32, #tpu.memory_space<vmem>>, vector<1x128xi32>
      %119 = vector.broadcast %118 : vector<1x128xi32> to vector<128x128xi32>
      %120 = arith.cmpi eq, %117, %119 : vector<128x128xi32>
      %121 = arith.extui %120 : vector<128x128xi1> to vector<128x128xi32>
      %122 = arith.sitofp %121 : vector<128x128xi32> to vector<128x128xf32>
      %123 = arith.truncf %122 : vector<128x128xf32> to vector<128x128xbf16>
      %c0_64 = arith.constant 0 : index
      %c0_65 = arith.constant 0 : index
      %124 = vector.load %arg11[%c0_64, %c0_65] : memref<128x128xbf16, #tpu.memory_space<vmem>>, vector<128x128xbf16>
      tpu.vector_store %arg11[%c0_64, %c0_65], %123 {strides = array<i32>} : memref<128x128xbf16, #tpu.memory_space<vmem>>, vector<128x128xbf16>,
    } else {
    }
    %c0 = arith.constant 0 : index
    %c0_1 = arith.constant 0 : index
    %3 = vector.load %arg10[%c0, %c0_1] : memref<128x128xbf16, #tpu.memory_space<vmem>>, vector<128x128xbf16>
    %c0_2 = arith.constant 0 : index
    %c0_3 = arith.constant 0 : index
    %4 = vector.load %arg11[%c0_2, %c0_3] : memref<128x128xbf16, #tpu.memory_space<vmem>>, vector<128x128xbf16>
    %c0_4 = arith.constant 0 : index
    %c0_5 = arith.constant 0 : index
    %c0_6 = arith.constant 0 : index
    %5 = vector.load %arg2[%c0_4, %c0_5, %c0_6] : memref<1x128x128xbf16, #tpu.memory_space<vmem>>, vector<1x128x128xbf16>
    %6 = vector.shape_cast %5 : vector<1x128x128xbf16> to vector<128x128xbf16>
    %c0_7 = arith.constant 0 : index
    %c0_8 = arith.constant 0 : index
    %c0_9 = arith.constant 0 : index
    %7 = vector.load %arg1[%c0_7, %c0_8, %c0_9] : memref<1x128x128xbf16, #tpu.memory_space<vmem>>, vector<1x128x128xbf16>
    %8 = vector.shape_cast %7 : vector<1x128x128xbf16> to vector<128x128xbf16>
    %9 = arith.extf %8 : vector<128x128xbf16> to vector<128x128xf32>
    %c0_i32_10 = arith.constant 0 : i32
    %10 = arith.truncf %9 : vector<128x128xf32> to vector<128x128xbf16>
    %cst = arith.constant dense<0.000000e+00> : vector<128x128xf32>
    %11 = tpu.matmul %3, %10, %cst {dimension_numbers = #tpu.dot_dimension_numbers<[1], [0], [0], [1], [0, 0, 1, 1], [], []>} : vector<128x128xbf16>, vector<128x128xbf16>, vector<128x128xf32> -> vector<128x128xf32>
    %12 = arith.truncf %11 : vector<128x128xf32> to vector<128x128xbf16>
    %13 = tpu.concatenate %12, %6 in 1 : vector<128x128xbf16>, vector<128x128xbf16> -> vector<128x256xbf16>
    %14 = arith.index_cast %c0_i32_10 : i32 to index
    %c0_11 = arith.constant 0 : index
    %c0_12 = arith.constant 0 : index
    %15 = vector.load %arg5[%14, %c0_11, %c0_12] : memref<3x256x128xbf16, #tpu.memory_space<vmem>>, vector<1x256x128xbf16>
    %16 = vector.shape_cast %15 : vector<1x256x128xbf16> to vector<256x128xbf16>
    %cst_13 = arith.constant dense<0.000000e+00> : vector<128x128xf32>
    %17 = tpu.matmul %13, %16, %cst_13 {dimension_numbers = #tpu.dot_dimension_numbers<[1], [0], [0], [1], [0, 0, 1, 1], [], []>} : vector<128x256xbf16>, vector<256x128xbf16>, vector<128x128xf32> -> vector<128x128xf32>
    %18 = arith.index_cast %c0_i32_10 : i32 to index
    %c0_14 = arith.constant 0 : index
    %c0_15 = arith.constant 0 : index
    %19 = vector.load %arg6[%18, %c0_14, %c0_15] : memref<3x1x128xf32, #tpu.memory_space<vmem>>, vector<1x1x128xf32>
    %20 = vector.shape_cast %19 : vector<1x1x128xf32> to vector<1x128xf32>
    %21 = vector.broadcast %20 : vector<1x128xf32> to vector<128x128xf32>
    %22 = arith.addf %17, %21 : vector<128x128xf32>
    %cst_16 = arith.constant 0.000000e+00 : f32
    %23 = vector.broadcast %cst_16 : f32 to vector<128x128xf32>
    %24 = arith.maximumf %22, %23 : vector<128x128xf32>
    %25 = arith.truncf %24 : vector<128x128xf32> to vector<128x128xbf16>
    %cst_17 = arith.constant dense<0.000000e+00> : vector<128x128xf32>
    %26 = tpu.matmul %4, %25, %cst_17 {dimension_numbers = #tpu.dot_dimension_numbers<[1], [0], [0], [1], [0, 0, 1, 1], [], []>} : vector<128x128xbf16>, vector<128x128xbf16>, vector<128x128xf32> -> vector<128x128xf32>
    %27 = arith.truncf %9 : vector<128x128xf32> to vector<128x128xbf16>
    %28 = arith.truncf %26 : vector<128x128xf32> to vector<128x128xbf16>
    %29 = tpu.concatenate %27, %28 in 1 : vector<128x128xbf16>, vector<128x128xbf16> -> vector<128x256xbf16>
    %30 = arith.index_cast %c0_i32_10 : i32 to index
    %c0_18 = arith.constant 0 : index
    %c0_19 = arith.constant 0 : index
    %31 = vector.load %arg7[%30, %c0_18, %c0_19] : memref<3x256x128xbf16, #tpu.memory_space<vmem>>, vector<1x256x128xbf16>
    %32 = vector.shape_cast %31 : vector<1x256x128xbf16> to vector<256x128xbf16>
    %cst_20 = arith.constant dense<0.000000e+00> : vector<128x128xf32>
    %33 = tpu.matmul %29, %32, %cst_20 {dimension_numbers = #tpu.dot_dimension_numbers<[1], [0], [0], [1], [0, 0, 1, 1], [], []>} : vector<128x256xbf16>, vector<256x128xbf16>, vector<128x128xf32> -> vector<128x128xf32>
    %34 = arith.index_cast %c0_i32_10 : i32 to index
    %c0_21 = arith.constant 0 : index
    %c0_22 = arith.constant 0 : index
    %35 = vector.load %arg8[%34, %c0_21, %c0_22] : memref<3x1x128xf32, #tpu.memory_space<vmem>>, vector<1x1x128xf32>
    %36 = vector.shape_cast %35 : vector<1x1x128xf32> to vector<1x128xf32>
    %37 = vector.broadcast %36 : vector<1x128xf32> to vector<128x128xf32>
    %38 = arith.addf %33, %37 : vector<128x128xf32>
    %cst_23 = arith.constant 0.000000e+00 : f32
    %39 = vector.broadcast %cst_23 : f32 to vector<128x128xf32>
    %40 = arith.maximumf %38, %39 : vector<128x128xf32>
    %c1_i32 = arith.constant 1 : i32
    %41 = arith.truncf %40 : vector<128x128xf32> to vector<128x128xbf16>
    %cst_24 = arith.constant dense<0.000000e+00> : vector<128x128xf32>
    %42 = tpu.matmul %3, %41, %cst_24 {dimension_numbers = #tpu.dot_dimension_numbers<[1], [0], [0], [1], [0, 0, 1, 1], [], []>} : vector<128x128xbf16>, vector<128x128xbf16>, vector<128x128xf32> -> vector<128x128xf32>
    %43 = arith.truncf %42 : vector<128x128xf32> to vector<128x128xbf16>
    %44 = tpu.concatenate %43, %6 in 1 : vector<128x128xbf16>, vector<128x128xbf16> -> vector<128x256xbf16>
    %45 = arith.index_cast %c1_i32 : i32 to index
    %c0_25 = arith.constant 0 : index
    %c0_26 = arith.constant 0 : index
    %46 = vector.load %arg5[%45, %c0_25, %c0_26] : memref<3x256x128xbf16, #tpu.memory_space<vmem>>, vector<1x256x128xbf16>
    %47 = vector.shape_cast %46 : vector<1x256x128xbf16> to vector<256x128xbf16>
    %cst_27 = arith.constant dense<0.000000e+00> : vector<128x128xf32>
    %48 = tpu.matmul %44, %47, %cst_27 {dimension_numbers = #tpu.dot_dimension_numbers<[1], [0], [0], [1], [0, 0, 1, 1], [], []>} : vector<128x256xbf16>, vector<256x128xbf16>, vector<128x128xf32> -> vector<128x128xf32>
    %49 = arith.index_cast %c1_i32 : i32 to index
    %c0_28 = arith.constant 0 : index
    %c0_29 = arith.constant 0 : index
    %50 = vector.load %arg6[%49, %c0_28, %c0_29] : memref<3x1x128xf32, #tpu.memory_space<vmem>>, vector<1x1x128xf32>
    %51 = vector.shape_cast %50 : vector<1x1x128xf32> to vector<1x128xf32>
    %52 = vector.broadcast %51 : vector<1x128xf32> to vector<128x128xf32>
    %53 = arith.addf %48, %52 : vector<128x128xf32>
    %cst_30 = arith.constant 0.000000e+00 : f32
    %54 = vector.broadcast %cst_30 : f32 to vector<128x128xf32>
    %55 = arith.maximumf %53, %54 : vector<128x128xf32>
    %56 = arith.truncf %55 : vector<128x128xf32> to vector<128x128xbf16>
    %cst_31 = arith.constant dense<0.000000e+00> : vector<128x128xf32>
    %57 = tpu.matmul %4, %56, %cst_31 {dimension_numbers = #tpu.dot_dimension_numbers<[1], [0], [0], [1], [0, 0, 1, 1], [], []>} : vector<128x128xbf16>, vector<128x128xbf16>, vector<128x128xf32> -> vector<128x128xf32>
    %58 = arith.truncf %40 : vector<128x128xf32> to vector<128x128xbf16>
    %59 = arith.truncf %57 : vector<128x128xf32> to vector<128x128xbf16>
    %60 = tpu.concatenate %58, %59 in 1 : vector<128x128xbf16>, vector<128x128xbf16> -> vector<128x256xbf16>
    %61 = arith.index_cast %c1_i32 : i32 to index
    %c0_32 = arith.constant 0 : index
    %c0_33 = arith.constant 0 : index
    %62 = vector.load %arg7[%61, %c0_32, %c0_33] : memref<3x256x128xbf16, #tpu.memory_space<vmem>>, vector<1x256x128xbf16>
    %63 = vector.shape_cast %62 : vector<1x256x128xbf16> to vector<256x128xbf16>
    %cst_34 = arith.constant dense<0.000000e+00> : vector<128x128xf32>
    %64 = tpu.matmul %60, %63, %cst_34 {dimension_numbers = #tpu.dot_dimension_numbers<[1], [0], [0], [1], [0, 0, 1, 1], [], []>} : vector<128x256xbf16>, vector<256x128xbf16>, vector<128x128xf32> -> vector<128x128xf32>
    %65 = arith.index_cast %c1_i32 : i32 to index
    %c0_35 = arith.constant 0 : index
    %c0_36 = arith.constant 0 : index
    %66 = vector.load %arg8[%65, %c0_35, %c0_36] : memref<3x1x128xf32, #tpu.memory_space<vmem>>, vector<1x1x128xf32>
    %67 = vector.shape_cast %66 : vector<1x1x128xf32> to vector<1x128xf32>
    %68 = vector.broadcast %67 : vector<1x128xf32> to vector<128x128xf32>
    %69 = arith.addf %64, %68 : vector<128x128xf32>
    %cst_37 = arith.constant 0.000000e+00 : f32
    %70 = vector.broadcast %cst_37 : f32 to vector<128x128xf32>
    %71 = arith.maximumf %69, %70 : vector<128x128xf32>
    %c2_i32 = arith.constant 2 : i32
    %72 = arith.truncf %71 : vector<128x128xf32> to vector<128x128xbf16>
    %cst_38 = arith.constant dense<0.000000e+00> : vector<128x128xf32>
    %73 = tpu.matmul %3, %72, %cst_38 {dimension_numbers = #tpu.dot_dimension_numbers<[1], [0], [0], [1], [0, 0, 1, 1], [], []>} : vector<128x128xbf16>, vector<128x128xbf16>, vector<128x128xf32> -> vector<128x128xf32>
    %74 = arith.truncf %73 : vector<128x128xf32> to vector<128x128xbf16>
    %75 = tpu.concatenate %74, %6 in 1 : vector<128x128xbf16>, vector<128x128xbf16> -> vector<128x256xbf16>
    %76 = arith.index_cast %c2_i32 : i32 to index
    %c0_39 = arith.constant 0 : index
    %c0_40 = arith.constant 0 : index
    %77 = vector.load %arg5[%76, %c0_39, %c0_40] : memref<3x256x128xbf16, #tpu.memory_space<vmem>>, vector<1x256x128xbf16>
    %78 = vector.shape_cast %77 : vector<1x256x128xbf16> to vector<256x128xbf16>
    %cst_41 = arith.constant dense<0.000000e+00> : vector<128x128xf32>
    %79 = tpu.matmul %75, %78, %cst_41 {dimension_numbers = #tpu.dot_dimension_numbers<[1], [0], [0], [1], [0, 0, 1, 1], [], []>} : vector<128x256xbf16>, vector<256x128xbf16>, vector<128x128xf32> -> vector<128x128xf32>
    %80 = arith.index_cast %c2_i32 : i32 to index
    %c0_42 = arith.constant 0 : index
    %c0_43 = arith.constant 0 : index
    %81 = vector.load %arg6[%80, %c0_42, %c0_43] : memref<3x1x128xf32, #tpu.memory_space<vmem>>, vector<1x1x128xf32>
    %82 = vector.shape_cast %81 : vector<1x1x128xf32> to vector<1x128xf32>
    %83 = vector.broadcast %82 : vector<1x128xf32> to vector<128x128xf32>
    %84 = arith.addf %79, %83 : vector<128x128xf32>
    %cst_44 = arith.constant 0.000000e+00 : f32
    %85 = vector.broadcast %cst_44 : f32 to vector<128x128xf32>
    %86 = arith.maximumf %84, %85 : vector<128x128xf32>
    %87 = arith.truncf %86 : vector<128x128xf32> to vector<128x128xbf16>
    %cst_45 = arith.constant dense<0.000000e+00> : vector<128x128xf32>
    %88 = tpu.matmul %4, %87, %cst_45 {dimension_numbers = #tpu.dot_dimension_numbers<[1], [0], [0], [1], [0, 0, 1, 1], [], []>} : vector<128x128xbf16>, vector<128x128xbf16>, vector<128x128xf32> -> vector<128x128xf32>
    %89 = arith.truncf %71 : vector<128x128xf32> to vector<128x128xbf16>
    %90 = arith.truncf %88 : vector<128x128xf32> to vector<128x128xbf16>
    %91 = tpu.concatenate %89, %90 in 1 : vector<128x128xbf16>, vector<128x128xbf16> -> vector<128x256xbf16>
    %92 = arith.index_cast %c2_i32 : i32 to index
    %c0_46 = arith.constant 0 : index
    %c0_47 = arith.constant 0 : index
    %93 = vector.load %arg7[%92, %c0_46, %c0_47] : memref<3x256x128xbf16, #tpu.memory_space<vmem>>, vector<1x256x128xbf16>
    %94 = vector.shape_cast %93 : vector<1x256x128xbf16> to vector<256x128xbf16>
    %cst_48 = arith.constant dense<0.000000e+00> : vector<128x128xf32>
    %95 = tpu.matmul %91, %94, %cst_48 {dimension_numbers = #tpu.dot_dimension_numbers<[1], [0], [0], [1], [0, 0, 1, 1], [], []>} : vector<128x256xbf16>, vector<256x128xbf16>, vector<128x128xf32> -> vector<128x128xf32>
    %96 = arith.index_cast %c2_i32 : i32 to index
    %c0_49 = arith.constant 0 : index
    %c0_50 = arith.constant 0 : index
    %97 = vector.load %arg8[%96, %c0_49, %c0_50] : memref<3x1x128xf32, #tpu.memory_space<vmem>>, vector<1x1x128xf32>
    %98 = vector.shape_cast %97 : vector<1x1x128xf32> to vector<1x128xf32>
    %99 = vector.broadcast %98 : vector<1x128xf32> to vector<128x128xf32>
    %100 = arith.addf %95, %99 : vector<128x128xf32>
    %cst_51 = arith.constant 0.000000e+00 : f32
    %101 = vector.broadcast %cst_51 : f32 to vector<128x128xf32>
    %102 = arith.maximumf %100, %101 : vector<128x128xf32>
    %c3_i32 = arith.constant 3 : i32
    %c0_i32_52 = arith.constant 0 : i32
    %103 = arith.cmpi eq, %arg0, %c0_i32_52 : i32
    %104 = arith.extui %103 : i1 to i32
    %c0_i32_53 = arith.constant 0 : i32
    %105 = arith.cmpi ne, %104, %c0_i32_53 : i32
    scf.if %105 {
      %cst_58 = arith.constant 0.000000e+00 : f32
      %109 = vector.broadcast %cst_58 : f32 to vector<128x128xf32>
      %c0_59 = arith.constant 0 : index
      %c0_60 = arith.constant 0 : index
      %110 = vector.load %arg9[%c0_59, %c0_60] : memref<128x128xf32, #tpu.memory_space<vmem>>, vector<128x128xf32>
      tpu.vector_store %arg9[%c0_59, %c0_60], %109 {strides = array<i32>} : memref<128x128xf32, #tpu.memory_space<vmem>>, vector<128x128xf32>,
    } else {
    }
    %c0_54 = arith.constant 0 : index
    %c0_55 = arith.constant 0 : index
    %106 = vector.load %arg9[%c0_54, %c0_55] : memref<128x128xf32, #tpu.memory_space<vmem>>, vector<128x128xf32>
    %107 = arith.addf %106, %102 : vector<128x128xf32>
    %c0_56 = arith.constant 0 : index
    %c0_57 = arith.constant 0 : index
    %108 = vector.load %arg9[%c0_56, %c0_57] : memref<128x128xf32, #tpu.memory_space<vmem>>, vector<128x128xf32>
    tpu.vector_store %arg9[%c0_56, %c0_57], %107 {strides = array<i32>} : memref<128x128xf32, #tpu.memory_space<vmem>>, vector<128x128xf32>,
    return
  }
  func.func @transform_0(%arg0: i32) -> (i32, i32, i32) {
    %c0_i32 = arith.constant 0 : i32
    %c0_i32_0 = arith.constant 0 : i32
    %c0_i32_1 = arith.constant 0 : i32
    return %arg0, %c0_i32, %c0_i32_0 : i32, i32, i32
  }
  func.func @transform_1(%arg0: i32) -> (i32, i32, i32) {
    %c0_i32 = arith.constant 0 : i32
    %c0_i32_0 = arith.constant 0 : i32
    %c0_i32_1 = arith.constant 0 : i32
    return %arg0, %c0_i32, %c0_i32_0 : i32, i32, i32
  }
  func.func @transform_2(%arg0: i32) -> (i32, i32) {
    %c0_i32 = arith.constant 0 : i32
    %c0_i32_0 = arith.constant 0 : i32
    %c0_i32_1 = arith.constant 0 : i32
    return %c0_i32, %c0_i32_0 : i32, i32
  }
  func.func @transform_3(%arg0: i32) -> (i32, i32) {
    %c0_i32 = arith.constant 0 : i32
    %c0_i32_0 = arith.constant 0 : i32
    %c0_i32_1 = arith.constant 0 : i32
    return %c0_i32, %c0_i32_0 : i32, i32
  }
  func.func @transform_4(%arg0: i32) -> (i32, i32, i32) {
    %c0_i32 = arith.constant 0 : i32
    %c0_i32_0 = arith.constant 0 : i32
    %c0_i32_1 = arith.constant 0 : i32
    %c0_i32_2 = arith.constant 0 : i32
    return %c0_i32, %c0_i32_0, %c0_i32_1 : i32, i32, i32
  }
  func.func @transform_5(%arg0: i32) -> (i32, i32, i32) {
    %c0_i32 = arith.constant 0 : i32
    %c0_i32_0 = arith.constant 0 : i32
    %c0_i32_1 = arith.constant 0 : i32
    %c0_i32_2 = arith.constant 0 : i32
    return %c0_i32, %c0_i32_0, %c0_i32_1 : i32, i32, i32
  }
  func.func @transform_6(%arg0: i32) -> (i32, i32, i32) {
    %c0_i32 = arith.constant 0 : i32
    %c0_i32_0 = arith.constant 0 : i32
    %c0_i32_1 = arith.constant 0 : i32
    %c0_i32_2 = arith.constant 0 : i32
    return %c0_i32, %c0_i32_0, %c0_i32_1 : i32, i32, i32
  }
  func.func @transform_7(%arg0: i32) -> (i32, i32, i32) {
    %c0_i32 = arith.constant 0 : i32
    %c0_i32_0 = arith.constant 0 : i32
    %c0_i32_1 = arith.constant 0 : i32
    %c0_i32_2 = arith.constant 0 : i32
    return %c0_i32, %c0_i32_0, %c0_i32_1 : i32, i32, i32
  }
  func.func @transform_8(%arg0: i32) -> (i32, i32) {
    %c0_i32 = arith.constant 0 : i32
    %c0_i32_0 = arith.constant 0 : i32
    %c0_i32_1 = arith.constant 0 : i32
    return %c0_i32, %c0_i32_0 : i32, i32
  }
}

</mosaic_0001>

<bundles_post_ra>
// kernel: gcn_forward.1
= control target key start
LH: loop header
LB: loop body
LE: loop exit
PB: predicated region body
PF: predicated region fallthrough
CT: control target
= control target key end

     0   :  { %s4234_s27 = smov 0   ;;  %s5312_s0 = inlined_call_operand.vmem [shape: bf16[2,128,128], index: 0, kind: input, shape index: {}]   ;;  %s5313_s1 = inlined_call_operand.vmem [shape: bf16[2,128,128], index: 1, kind: input, shape index: {}]   ;;  %s5314_s2 = inlined_call_operand.vmem [shape: s32[128,1], index: 2, kind: input, shape index: {}]   ;;  %s5315_s3 = inlined_call_operand.vmem [shape: s32[1,128], index: 3, kind: input, shape index: {}]   ;;  %s5316_s4 = inlined_call_operand.vmem [shape: bf16[3,256,128], index: 4, kind: input, shape index: {}]   ;;  %s5317_s5 = inlined_call_operand.vmem [shape: f32[3,1,128], index: 5, kind: input, shape index: {}]   ;;  %s5318_s6 = inlined_call_operand.vmem [shape: bf16[3,256,128], index: 6, kind: input, shape index: {}]   ;;  %s5319_s7 = inlined_call_operand.vmem [shape: f32[3,1,128], index: 7, kind: input, shape index: {}]   ;;  %s5320_s8 = inlined_call_operand.vmem [shape: f32[128,128], index: 8, kind: output, shape index: {}]  }
   0x1 LB: > { %s4240_s28 = sadd.s32 4294967295, %s4184_s27   ;;  %p3240_p0 = scmp.ge.s32.totalorder %s4184_s27, 1  ;;  %s4184_s27 = sphi %s4234_s27, %s18_s27  }
   0x2   : > { %p267_p1 = scmp.lt.s32.totalorder %s4184_s27, 3 }
   0x4   : > { %p268_p2 = pnand %p3240_p0, %p267_p1 }
   0x6   : > { %271 = sbr.rel (%p268_p2) target bundleno = 2746 (0xaba), region = 52 }
   0xb   : > { %p301_p3 = scmp.lt.s32.totalorder %s4240_s28, 1  ;;  %p3245_p4 = scmp.ne.s32.totalorder %s4240_s28, 0 }
   0xd   : > { %s302_s29 = scalar_select %p301_p3, %s4240_s28, 1 }
   0xe   : > { %314 = sbr.rel (%p3245_p4) target bundleno = 182 (0xb6), region = 56 }
   0xf   : > { %s3925_s30 = sshll.u32 %s302_s29, 6 }
  0x10   : > { %s4249_s11 = scalar_lea.vmem %s5312_s0, %s3925_s30  ;;  %s4254_s14 = scalar_lea.vmem %s5313_s1, %s3925_s30 }
  0x13   : > { %v321_v0 = vld [vmem:[%s5314_s2 + $0x20] sm:$0xff]  ;;  %v319_v1 = vld [vmem:[%s5314_s2 + $0x10] sm:$0xff]  ;;  %v4186_v3 = vmov 0   ;;  %v322_v4 = vld [vmem:[%s5314_s2 + $0x28] sm:$0xff]  ;;  %v315_v17 = vlaneseq  ;;  %v4187_v35 = vmov 0.0  }
  0x14   : > { %v317_v2 = vld [vmem:[%s5314_s2] sm:$0xff]  ;;  %4146 = vset.pattern.permute.xlu2 %v4186_v3  ;;  %4145 = vset.pattern.permute.xlu1 %v4186_v3  ;;  %v320_v5 = vld [vmem:[%s5314_s2 + $0x18] sm:$0xff]  ;;  %v318_v6 = vld [vmem:[%s5314_s2 + $0x8] sm:$0xff] }
  0x15   : > { %4144 = vset.pattern.permute.xlu0 %v4186_v3  ;;  %346 = vperm.xlu2 %4146, %v321_v0   ;;  %v325_v7 = vld [vmem:[%s5314_s2 + $0x40] sm:$0xff]  ;;  %v324_v8 = vld [vmem:[%s5314_s2 + $0x38] sm:$0xff]  ;;  %v323_v9 = vld [vmem:[%s5314_s2 + $0x30] sm:$0xff]  ;;  %v462_v18 = vshrl.u32 %v315_v17, 7  ;;  %v316_v61 = vand.u32 127, %v315_v17 }
  0x16   : > { %340 = vperm.xlu1 %4145, %v319_v1   ;;  %334 = vperm.xlu0 %4144, %v317_v2   ;;  %v328_v10 = vld [vmem:[%s5314_s2 + $0x58] sm:$0xff]  ;;  %v327_v11 = vld [vmem:[%s5314_s2 + $0x50] sm:$0xff]  ;;  %v326_v12 = vld [vmem:[%s5314_s2 + $0x48] sm:$0xff] }
  0x17   : > { %v331_v13 = vld [vmem:[%s5314_s2 + $0x70] sm:$0xff]  ;;  %v330_v14 = vld [vmem:[%s5314_s2 + $0x68] sm:$0xff]  ;;  %v329_v15 = vld [vmem:[%s5314_s2 + $0x60] sm:$0xff]  ;;  %v463_v20 = vadd.s32 8, %v462_v18  ;;  %v464_v21 = vadd.s32 16, %v462_v18  ;;  %v465_v22 = vadd.s32 24, %v462_v18 }
  0x18   : > { %v332_v16 = vld [vmem:[%s5314_s2 + $0x78] sm:$0xff]  ;;  %v4147_v19 = vld [vmem:[%s5315_s3] ss:$0 sm:$0xff]  ;;  %v466_v23 = vadd.s32 32, %v462_v18  ;;  %v467_v24 = vadd.s32 40, %v462_v18  ;;  %v468_v25 = vadd.s32 48, %v462_v18 }
  0x19   : > { %v469_v26 = vadd.s32 56, %v462_v18  ;;  %v470_v27 = vadd.s32 64, %v462_v18  ;;  %v471_v28 = vadd.s32 72, %v462_v18  ;;  %v472_v29 = vadd.s32 80, %v462_v18 }
  0x1a   : > { %v473_v30 = vadd.s32 88, %v462_v18  ;;  %v474_v31 = vadd.s32 96, %v462_v18  ;;  %v475_v32 = vadd.s32 104, %v462_v18  ;;  %v476_v33 = vadd.s32 112, %v462_v18 }
  0x1b   : > { %v477_v34 = vadd.s32 120, %v462_v18  ;;  %vm480_vm0 = vcmp.eq.s32.totalorder %v462_v18, %v4147_v19  ;;  %vm481_vm1 = vcmp.eq.s32.totalorder %v463_v20, %v4147_v19  ;;  %vm482_vm2 = vcmp.eq.s32.totalorder %v464_v21, %v4147_v19 }
  0x1c   : > { %vm483_vm3 = vcmp.eq.s32.totalorder %v465_v22, %v4147_v19  ;;  %vm484_vm4 = vcmp.eq.s32.totalorder %v466_v23, %v4147_v19  ;;  %vm485_vm5 = vcmp.eq.s32.totalorder %v467_v24, %v4147_v19  ;;  %vm486_vm6 = vcmp.eq.s32.totalorder %v468_v25, %v4147_v19 }
  0x1d   : > { %349 = vperm.xlu2 %4146, %v322_v4   ;;  %vm487_vm7 = vcmp.eq.s32.totalorder %v469_v26, %v4147_v19  ;;  %vm488_vm8 = vcmp.eq.s32.totalorder %v470_v27, %v4147_v19  ;;  %vm489_vm9 = vcmp.eq.s32.totalorder %v471_v28, %v4147_v19  ;;  %vm490_vm10 = vcmp.eq.s32.totalorder %v472_v29, %v4147_v19 }
  0x1e   : > { %343 = vperm.xlu1 %4145, %v320_v5   ;;  %337 = vperm.xlu0 %4144, %v318_v6   ;;  %vm491_vm11 = vcmp.eq.s32.totalorder %v473_v30, %v4147_v19  ;;  %vm492_vm12 = vcmp.eq.s32.totalorder %v474_v31, %v4147_v19  ;;  %vm493_vm13 = vcmp.eq.s32.totalorder %v475_v32, %v4147_v19  ;;  %v3262_v36 = vsel %vm480_vm0, 1.0, %v4187_v35 }
  0x1f   : > { %v3263_v37 = vsel %vm481_vm1, 1.0, %v4187_v35  ;;  %v3264_v38 = vsel %vm482_vm2, 1.0, %v4187_v35  ;;  %v3265_v39 = vsel %vm483_vm3, 1.0, %v4187_v35  ;;  %v3266_v40 = vsel %vm484_vm4, 1.0, %v4187_v35 }
  0x20   : > { %v3267_v41 = vsel %vm485_vm5, 1.0, %v4187_v35  ;;  %v3268_v42 = vsel %vm486_vm6, 1.0, %v4187_v35  ;;  %v3269_v43 = vsel %vm487_vm7, 1.0, %v4187_v35  ;;  %vm494_vm14 = vcmp.eq.s32.totalorder %v476_v33, %v4147_v19 }
  0x21   : > { %vm495_vm15 = vcmp.eq.s32.totalorder %v477_v34, %v4147_v19  ;;  %v3270_v44 = vsel %vm488_vm8, 1.0, %v4187_v35  ;;  %v3271_v45 = vsel %vm489_vm9, 1.0, %v4187_v35  ;;  %v3272_v46 = vsel %vm490_vm10, 1.0, %v4187_v35 }
  0x22   : > { %v3273_v47 = vsel %vm491_vm11, 1.0, %v4187_v35  ;;  %v3274_v48 = vsel %vm492_vm12, 1.0, %v4187_v35  ;;  %v4080_v49 = vpack.c.bf16 %v3263_v37, %v3262_v36  ;;  %v3275_v50 = vsel %vm493_vm13, 1.0, %v4187_v35 }
  0x23   : > { %v4083_v51 = vpack.c.bf16 %v3265_v39, %v3264_v38  ;;  %v4086_v52 = vpack.c.bf16 %v3267_v41, %v3266_v40  ;;  %v4089_v53 = vpack.c.bf16 %v3269_v43, %v3268_v42  ;;  %v3276_v54 = vsel %vm494_vm14, 1.0, %v4187_v35 }
  0x24   : > { %v3277_v55 = vsel %vm495_vm15, 1.0, %v4187_v35  ;;  %4081 = vst [vmem:[#allocation3] sm:$0xff] %v4080_v49   ;;  %v4092_v56 = vpack.c.bf16 %v3271_v45, %v3270_v44  ;;  %v4095_v57 = vpack.c.bf16 %v3273_v47, %v3272_v46  ;;  %v4098_v58 = vpack.c.bf16 %v3275_v50, %v3274_v48 }
  0x25   : > { %358 = vperm.xlu2 %4146, %v325_v7   ;;  %4110 = vst [vmem:[#allocation3 + $0x18] sm:$0xff] %v4083_v51   ;;  %v4101_v59 = vpack.c.bf16 %v3277_v55, %v3276_v54 }
  0x26   : > { %355 = vperm.xlu1 %4145, %v324_v8   ;;  %352 = vperm.xlu0 %4144, %v323_v9   ;;  %4111 = vst [vmem:[#allocation3 + $0x10] sm:$0xff] %v4086_v52  }
  0x27   : > { %4112 = vst [vmem:[#allocation3 + $0x20] sm:$0xff] %v4089_v53  }
  0x28   : > { %4113 = vst [vmem:[#allocation3 + $0x28] sm:$0xff] %v4092_v56  }
  0x29   : > { %4114 = vst [vmem:[#allocation3 + $0x8] sm:$0xff] %v4095_v57  }
  0x2a   : > { %4115 = vst [vmem:[#allocation3 + $0x30] sm:$0xff] %v4098_v58  }
  0x2b   : > { %4116 = vst [vmem:[#allocation3 + $0x38] sm:$0xff] %v4101_v59  }
  0x2d   : > { %367 = vperm.xlu2 %4146, %v328_v10  }
  0x2e   : > { %364 = vperm.xlu1 %4145, %v327_v11   ;;  %361 = vperm.xlu0 %4144, %v326_v12  }
  0x35   : > { %376 = vperm.xlu2 %4146, %v331_v13  }
  0x36   : > { %373 = vperm.xlu1 %4145, %v330_v14   ;;  %370 = vperm.xlu0 %4144, %v329_v15  }
  0x3e   : > { %379 = vperm.xlu0 %4144, %v332_v16  }
  0x6f   : > { %v347_v60 = vpop.permute.xlu2 %346 }
  0x70   : > { %vm385_vm0 = vcmp.eq.s32.totalorder %v316_v61, %v347_v60 }
  0x71   : > { %v3250_v62 = vsel %vm385_vm0, 1.0, %v4187_v35 }
  0x77   : > { %v350_v63 = vpop.permute.xlu2 %349 }
  0x78   : > { %vm386_vm1 = vcmp.eq.s32.totalorder %v316_v61, %v350_v63 }
  0x79   : > { %v3251_v0 = vsel %vm386_vm1, 1.0, %v4187_v35 }
  0x7a   : > { %v4062_v1 = vpack.c.bf16 %v3251_v0, %v3250_v62 }
  0x7c   : > { %4104 = vst [vmem:[#allocation2 + $0x18] sm:$0xff] %v4062_v1  }
  0x7f   : > { %v359_v12 = vpop.permute.xlu2 %358 }
  0x80   : > { %vm389_vm8 = vcmp.eq.s32.totalorder %v316_v61, %v359_v12 }
  0x81   : > { %v3254_v21 = vsel %vm389_vm8, 1.0, %v4187_v35 }
  0x87   : > { %v368_v18 = vpop.permute.xlu2 %367 }
  0x88   : > { %v341_v2 = vpop.permute.xlu1 %340  ;;  %v335_v3 = vpop.permute.xlu0 %334  ;;  %vm392_vm9 = vcmp.eq.s32.totalorder %v316_v61, %v368_v18 }
  0x89   : > { %vm383_vm2 = vcmp.eq.s32.totalorder %v316_v61, %v341_v2  ;;  %vm381_vm3 = vcmp.eq.s32.totalorder %v316_v61, %v335_v3  ;;  %v3257_v22 = vsel %vm392_vm9, 1.0, %v4187_v35 }
  0x8a   : > { %v3248_v4 = vsel %vm383_vm2, 1.0, %v4187_v35  ;;  %v3246_v7 = vsel %vm381_vm3, 1.0, %v4187_v35 }
  0x8f   : > { %v377_v32 = vpop.permute.xlu2 %376 }
  0x90   : > { %v344_v5 = vpop.permute.xlu1 %343  ;;  %v338_v6 = vpop.permute.xlu0 %337  ;;  %vm395_vm14 = vcmp.eq.s32.totalorder %v316_v61, %v377_v32 }
  0x91   : > { %vm384_vm4 = vcmp.eq.s32.totalorder %v316_v61, %v344_v5  ;;  %vm382_vm5 = vcmp.eq.s32.totalorder %v316_v61, %v338_v6  ;;  %v3260_v34 = vsel %vm395_vm14, 1.0, %v4187_v35 }
  0x92   : > { %v3249_v8 = vsel %vm384_vm4, 1.0, %v4187_v35  ;;  %v3247_v9 = vsel %vm382_vm5, 1.0, %v4187_v35 }
  0x93   : > { %v4059_v10 = vpack.c.bf16 %v3249_v8, %v3248_v4  ;;  %v4056_v11 = vpack.c.bf16 %v3247_v9, %v3246_v7 }
  0x95   : > { %4103 = vst [vmem:[#allocation2] sm:$0xff] %v4059_v10  }
  0x96   : > { %4057 = vst [vmem:[#allocation2 + $0x30] sm:$0xff] %v4056_v11  }
  0x98   : > { %v356_v13 = vpop.permute.xlu1 %355  ;;  %v353_v14 = vpop.permute.xlu0 %352 }
  0x99   : > { %vm388_vm6 = vcmp.eq.s32.totalorder %v316_v61, %v356_v13  ;;  %vm387_vm7 = vcmp.eq.s32.totalorder %v316_v61, %v353_v14 }
  0x9a   : > { %v3253_v15 = vsel %vm388_vm6, 1.0, %v4187_v35  ;;  %v3252_v16 = vsel %vm387_vm7, 1.0, %v4187_v35 }
  0x9b   : > { %v4065_v17 = vpack.c.bf16 %v3253_v15, %v3252_v16 }
  0x9d   : > { %4105 = vst [vmem:[#allocation2 + $0x10] sm:$0xff] %v4065_v17  }
  0xa0   : > { %v365_v19 = vpop.permute.xlu1 %364  ;;  %v362_v20 = vpop.permute.xlu0 %361 }
  0xa1   : > { %vm391_vm10 = vcmp.eq.s32.totalorder %v316_v61, %v365_v19  ;;  %vm390_vm11 = vcmp.eq.s32.totalorder %v316_v61, %v362_v20 }
  0xa2   : > { %v3256_v23 = vsel %vm391_vm10, 1.0, %v4187_v35  ;;  %v3255_v24 = vsel %vm390_vm11, 1.0, %v4187_v35 }
  0xa3   : > { %v4071_v25 = vpack.c.bf16 %v3257_v22, %v3256_v23  ;;  %v4068_v26 = vpack.c.bf16 %v3255_v24, %v3254_v21 }
  0xa5   : > { %4107 = vst [vmem:[#allocation2 + $0x20] sm:$0xff] %v4071_v25  }
  0xa6   : > { %4106 = vst [vmem:[#allocation2 + $0x8] sm:$0xff] %v4068_v26  }
  0xa8   : > { %v374_v27 = vpop.permute.xlu1 %373  ;;  %v371_v28 = vpop.permute.xlu0 %370 }
  0xa9   : > { %vm394_vm12 = vcmp.eq.s32.totalorder %v316_v61, %v374_v27  ;;  %vm393_vm13 = vcmp.eq.s32.totalorder %v316_v61, %v371_v28 }
  0xaa   : > { %v3259_v29 = vsel %vm394_vm12, 1.0, %v4187_v35  ;;  %v3258_v30 = vsel %vm393_vm13, 1.0, %v4187_v35 }
  0xab   : > { %v4074_v31 = vpack.c.bf16 %v3259_v29, %v3258_v30 }
  0xad   : > { %4108 = vst [vmem:[#allocation2 + $0x28] sm:$0xff] %v4074_v31  }
  0xb0   : > { %v380_v33 = vpop.permute.xlu0 %379 }
  0xb1   : > { %vm396_vm15 = vcmp.eq.s32.totalorder %v316_v61, %v380_v33 }
  0xb2   : > { %v3261_v36 = vsel %vm396_vm15, 1.0, %v4187_v35 }
  0xb3   : > { %v4077_v37 = vpack.c.bf16 %v3261_v36, %v3260_v34 }
  0xb5   : > { %4109 = vst [vmem:[#allocation2 + $0x38] sm:$0xff] %v4077_v37  }
  0xb6 PF: > { %v4351_v38 = vld [vmem:[%s4249_s11 + $0x38] sm:$0xff]  ;;  %v4356_v39 = vld [vmem:[%s4249_s11 + $0x30] sm:$0xff]  ;;  %v4361_v35 = vld [vmem:[%s4249_s11 + $0x28] sm:$0xff] }
  0xb7   : > { %720 = vmatpush.bf16.msra.mxu0 %v4351_v38  ;;  %4117 = vmatpush.bf16.msra.mxu2 %v4351_v38  ;;  %v4366_v40 = vld [vmem:[%s4249_s11 + $0x20] sm:$0xff]  ;;  %v4371_v41 = vld [vmem:[%s4249_s11 + $0x18] sm:$0xff]  ;;  %v4376_v42 = vld [vmem:[%s4249_s11 + $0x10] sm:$0xff] }
  0xb8   : > { %v4381_v43 = vld [vmem:[%s4249_s11 + $0x8] sm:$0xff]  ;;  %v4386_v44 = vld [vmem:[%s4249_s11] sm:$0xff]  ;;  %v4388_v45 = vld [vmem:[#allocation2 + $0x30] sm:$0xff] }
  0xb9   : > { %v4390_v46 = vld [vmem:[#allocation2 + $0x8] sm:$0xff]  ;;  %v3974_v47 = vld [vmem:[%s5316_s4 + $0x78] sm:$0xff]  ;;  %v4399_v48 = vld [vmem:[#allocation2] sm:$0xff] }
  0xba   : > { %v4401_v49 = vld [vmem:[#allocation2 + $0x20] sm:$0xff]  ;;  %v3973_v50 = vld [vmem:[%s5316_s4 + $0x70] sm:$0xff]  ;;  %v3972_v51 = vld [vmem:[%s5316_s4 + $0x68] sm:$0xff] }
  0xbb   : > { %721 = vmatpush.bf16.msra.mxu0 %v4356_v39  ;;  %4118 = vmatpush.bf16.msra.mxu2 %v4356_v39  ;;  %v3971_v52 = vld [vmem:[%s5316_s4 + $0x60] sm:$0xff]  ;;  %v3970_v53 = vld [vmem:[%s5316_s4 + $0x58] sm:$0xff]  ;;  %v4419_v55 = vld [vmem:[#allocation2 + $0x28] sm:$0xff] }
  0xbc   : > { %v4417_v54 = vld [vmem:[#allocation2 + $0x18] sm:$0xff]  ;;  %v3969_v56 = vld [vmem:[%s5316_s4 + $0x50] sm:$0xff]  ;;  %v3968_v57 = vld [vmem:[%s5316_s4 + $0x48] sm:$0xff] }
  0xbd   : > { %v3967_v58 = vld [vmem:[%s5316_s4 + $0x40] sm:$0xff]  ;;  %v4432_v59 = vld [vmem:[#allocation2 + $0x10] sm:$0xff]  ;;  %v4434_v60 = vld [vmem:[#allocation2 + $0x38] sm:$0xff] }
  0xbe   : > { %v4439_v61 = vld [vmem:[%s4254_s14] sm:$0xff]  ;;  %v3966_v62 = vld [vmem:[%s5316_s4 + $0x38] sm:$0xff]  ;;  %v3965_v63 = vld [vmem:[%s5316_s4 + $0x30] sm:$0xff] }
  0xbf   : > { %722 = vmatpush.bf16.msra.mxu0 %v4361_v35  ;;  %4119 = vmatpush.bf16.msra.mxu2 %v4361_v35  ;;  %v3964_v0 = vld [vmem:[%s5316_s4 + $0x28] sm:$0xff]  ;;  %v3963_v1 = vld [vmem:[%s5316_s4 + $0x20] sm:$0xff]  ;;  %v3962_v3 = vld [vmem:[%s5316_s4 + $0x18] sm:$0xff] }
  0xc0   : > { %1013 = vmatpush.bf16.msra.mxu1 %v3966_v62  ;;  %4125 = vmatpush.bf16.msra.mxu3 %v3966_v62  ;;  %v4455_v2 = vld [vmem:[%s4254_s14 + $0x8] sm:$0xff]  ;;  %v4462_v4 = vld [vmem:[%s4254_s14 + $0x10] sm:$0xff]  ;;  %v3959_v7 = vld [vmem:[%s5316_s4] sm:$0xff] }
  0xc1   : > { %5327 = vst [vmem:[#allocation4_spill] sm:$0xff] %v4462_v4  ;;  %v3961_v5 = vld [vmem:[%s5316_s4 + $0x10] sm:$0xff]  ;;  %v3960_v6 = vld [vmem:[%s5316_s4 + $0x8] sm:$0xff]  ;;  %v4475_v8 = vld [vmem:[%s4254_s14 + $0x18] sm:$0xff] }
  0xc2   : > { %5328 = vst [vmem:[#allocation5_spill] sm:$0xff] %v4475_v8  ;;  %v4479_v9 = vld [vmem:[%s4254_s14 + $0x20] sm:$0xff]  ;;  %v4483_v21 = vld [vmem:[%s4254_s14 + $0x28] sm:$0xff]  ;;  %v4487_v37 = vld [vmem:[%s4254_s14 + $0x30] sm:$0xff] }
  0xc3   : > { %723 = vmatpush.bf16.msra.mxu0 %v4366_v40  ;;  %4120 = vmatpush.bf16.msra.mxu2 %v4366_v40  ;;  %5329 = vst [vmem:[#allocation6_spill] sm:$0xff] %v4479_v9 }
  0xc4   : > { %1014 = vmatpush.bf16.msra.mxu1 %v3965_v63  ;;  %4126 = vmatpush.bf16.msra.mxu3 %v3965_v63  ;;  %5330 = vst [vmem:[#allocation7_spill] sm:$0xff] %v4483_v21 }
  0xc5   : > { %5331 = vst [vmem:[#allocation8_spill] sm:$0xff] %v4487_v37 }
  0xc7   : > { %724 = vmatpush.bf16.msra.mxu0 %v4371_v41  ;;  %4121 = vmatpush.bf16.msra.mxu2 %v4371_v41 }
  0xc8   : > { %1015 = vmatpush.bf16.msra.mxu1 %v3964_v0  ;;  %4127 = vmatpush.bf16.msra.mxu3 %v3964_v0 }
  0xcb   : > { %725 = vmatpush.bf16.msra.mxu0 %v4376_v42  ;;  %4122 = vmatpush.bf16.msra.mxu2 %v4376_v42 }
  0xcc   : > { %1016 = vmatpush.bf16.msra.mxu1 %v3963_v1  ;;  %4128 = vmatpush.bf16.msra.mxu3 %v3963_v1 }
  0xcf   : > { %726 = vmatpush.bf16.msra.mxu0 %v4381_v43  ;;  %4123 = vmatpush.bf16.msra.mxu2 %v4381_v43 }
  0xd0   : > { %1017 = vmatpush.bf16.msra.mxu1 %v3962_v3  ;;  %4129 = vmatpush.bf16.msra.mxu3 %v3962_v3 }
  0xd3   : > { %727 = vmatpush.bf16.msra.mxu0 %v4386_v44  ;;  %4124 = vmatpush.bf16.msra.mxu2 %v4386_v44 }
  0xd4   : > { %1018 = vmatpush.bf16.msra.mxu1 %v3961_v5  ;;  %4130 = vmatpush.bf16.msra.mxu3 %v3961_v5 }
  0xd6   : > { %728 = vmatmul.bf16.vlgmr.msra.gmra.mxu0 %v4388_v45  ;;  %748 = vmatmul.bf16.vlgmr.msra.gmra.mxu2 %v4390_v46 }
  0xd7   : > { %1062 = vmatpush.bf16.msrb.mxu2 %v3974_v47 }
  0xd8   : > { %1019 = vmatpush.bf16.msra.mxu1 %v3960_v6  ;;  %4131 = vmatpush.bf16.msra.mxu3 %v3960_v6  ;;  %v4491_v6 = vld [vmem:[%s4254_s14 + $0x38] sm:$0xff] }
  0xd9   : > { %5332 = vst [vmem:[#allocation9_spill] sm:$0xff] %v4491_v6 }
  0xdb   : > { %1063 = vmatpush.bf16.msrb.mxu2 %v3973_v50 }
  0xdc   : > { %1020 = vmatpush.bf16.msra.mxu1 %v3959_v7  ;;  %4132 = vmatpush.bf16.msra.mxu3 %v3959_v7 }
  0xdf   : > { %1064 = vmatpush.bf16.msrb.mxu2 %v3972_v51 }
  0xe3   : > { %1065 = vmatpush.bf16.msrb.mxu2 %v3971_v52 }
  0xe6   : > { %733 = vmatmul.bf16.gmra.mxu0 %v4399_v48  ;;  %753 = vmatmul.bf16.gmra.mxu2 %v4401_v49 }
  0xe7   : > { %1066 = vmatpush.bf16.msrb.mxu2 %v3970_v53 }
  0xeb   : > { %1067 = vmatpush.bf16.msrb.mxu2 %v3969_v56 }
  0xef   : > { %1068 = vmatpush.bf16.msrb.mxu2 %v3968_v57 }
  0xf3   : > { %1069 = vmatpush.bf16.msrb.mxu2 %v3967_v58 }
  0xf6   : > { %738 = vmatmul.bf16.gmra.mxu0 %v4417_v54  ;;  %758 = vmatmul.bf16.gmra.mxu2 %v4419_v55 }
 0x106   : > { %743 = vmatmul.bf16.gmra.mxu0 %v4432_v59  ;;  %763 = vmatmul.bf16.gmra.mxu2 %v4434_v60 }
 0x116   : > { %1070 = vmatmul.bf16.vlgmr.msrb.gmra.mxu2 %v4439_v61 }
 0x126   : > { %1075 = vmatmul.bf16.gmra.mxu2 %v4455_v2 }
 0x136   : > { %1080 = vmatmul.bf16.gmra.mxu2 %v4462_v4 }
 0x146   : > { %1085 = vmatmul.bf16.gmra.mxu2 %v4475_v8 }
 0x153   : > { %v729_v10 = vpop.f32.mrf.mxu0 }
 0x154   : > { %v769_v11 = vpack.c.bf16 %v729_v10, %v729_v10 }
 0x156   : > { %1090 = vmatmul.bf16.gmra.mxu2 %v4479_v9  ;;  %v801_v14 = vunpack.c.l.b16 %v769_v11 }
 0x159   : > { %v749_v12 = vpop.f32.mrf.mxu2 }
 0x15a   : > { %v777_v17 = vpack.c.bf16 %v749_v12, %v749_v12 }
 0x15b   : > { %v731_v13 = vpop.f32.mrf.mxu0 }
 0x15c   : > { %v770_v15 = vpack.c.bf16 %v731_v13, %v731_v13  ;;  %v809_v23 = vunpack.c.l.b16 %v777_v17 }
 0x15e   : > { %v802_v16 = vunpack.c.l.b16 %v770_v15 }
 0x160   : > { %v817_v18 = vpack.c.b16 %v802_v16, %v801_v14 }
 0x161   : > { %v751_v19 = vpop.f32.mrf.mxu2 }
 0x162   : > { %v778_v20 = vpack.c.bf16 %v751_v19, %v751_v19  ;;  %1021 = vmatmul.bf16.vlgmr.msra.gmra.mxu1 %v817_v18 }
 0x163   : > { %v734_v22 = vpop.f32.mrf.mxu0 }
 0x164   : > { %v810_v24 = vunpack.c.l.b16 %v778_v20  ;;  %v771_v26 = vpack.c.bf16 %v734_v22, %v734_v22 }
 0x166   : > { %v821_v25 = vpack.c.b16 %v810_v24, %v809_v23  ;;  %1095 = vmatmul.bf16.gmra.mxu2 %v4483_v21  ;;  %v803_v29 = vunpack.c.l.b16 %v771_v26 }
 0x168   : > { %1041 = vmatmul.bf16.vlgmr.msra.gmra.mxu3 %v821_v25 }
 0x169   : > { %v754_v27 = vpop.f32.mrf.mxu2 }
 0x16a   : > { %v779_v32 = vpack.c.bf16 %v754_v27, %v754_v27 }
 0x16b   : > { %v736_v28 = vpop.f32.mrf.mxu0 }
 0x16c   : > { %v772_v30 = vpack.c.bf16 %v736_v28, %v736_v28  ;;  %v811_v50 = vunpack.c.l.b16 %v779_v32 }
 0x16e   : > { %v804_v31 = vunpack.c.l.b16 %v772_v30 }
 0x170   : > { %v818_v33 = vpack.c.b16 %v804_v31, %v803_v29 }
 0x171   : > { %v756_v34 = vpop.f32.mrf.mxu2 }
 0x172   : > { %v780_v36 = vpack.c.bf16 %v756_v34, %v756_v34  ;;  %1026 = vmatmul.bf16.gmra.mxu1 %v818_v33 }
 0x173   : > { %v739_v47 = vpop.f32.mrf.mxu0 }
 0x174   : > { %v812_v51 = vunpack.c.l.b16 %v780_v36  ;;  %v773_v53 = vpack.c.bf16 %v739_v47, %v739_v47 }
 0x176   : > { %v822_v52 = vpack.c.b16 %v812_v51, %v811_v50  ;;  %1100 = vmatmul.bf16.gmra.mxu2 %v4487_v37  ;;  %v805_v58 = vunpack.c.l.b16 %v773_v53  ;;  %v4511_v51 = vld [vmem:[%s5317_s5] ss:$0 sm:$0xff] }
 0x178   : > { %1046 = vmatmul.bf16.gmra.mxu3 %v822_v52 }
 0x179   : > { %v759_v56 = vpop.f32.mrf.mxu2 }
 0x17a   : > { %v781_v0 = vpack.c.bf16 %v759_v56, %v759_v56 }
 0x17b   : > { %v741_v57 = vpop.f32.mrf.mxu0 }
 0x17c   : > { %v774_v62 = vpack.c.bf16 %v741_v57, %v741_v57  ;;  %v813_v10 = vunpack.c.l.b16 %v781_v0 }
 0x17e   : > { %v806_v63 = vunpack.c.l.b16 %v774_v62 }
 0x180   : > { %v819_v1 = vpack.c.b16 %v806_v63, %v805_v58 }
 0x181   : > { %v761_v3 = vpop.f32.mrf.mxu2 }
 0x182   : > { %v782_v5 = vpack.c.bf16 %v761_v3, %v761_v3  ;;  %1031 = vmatmul.bf16.gmra.mxu1 %v819_v1 }
 0x183   : > { %v744_v7 = vpop.f32.mrf.mxu0 }
 0x184   : > { %v814_v11 = vunpack.c.l.b16 %v782_v5  ;;  %v775_v13 = vpack.c.bf16 %v744_v7, %v744_v7 }
 0x186   : > { %v823_v12 = vpack.c.b16 %v814_v11, %v813_v10  ;;  %1105 = vmatmul.bf16.gmra.mxu2 %v4491_v6  ;;  %v807_v16 = vunpack.c.l.b16 %v775_v13 }
 0x188   : > { %1051 = vmatmul.bf16.gmra.mxu3 %v823_v12 }
 0x189   : > { %v764_v14 = vpop.f32.mrf.mxu2 }
 0x18a   : > { %v783_v19 = vpack.c.bf16 %v764_v14, %v764_v14 }
 0x18b   : > { %v746_v15 = vpop.f32.mrf.mxu0 }
 0x18c   : > { %v776_v17 = vpack.c.bf16 %v746_v15, %v746_v15  ;;  %v815_v24 = vunpack.c.l.b16 %v783_v19 }
 0x18e   : > { %v808_v18 = vunpack.c.l.b16 %v776_v17 }
 0x190   : > { %v820_v20 = vpack.c.b16 %v808_v18, %v807_v16 }
 0x191   : > { %v766_v22 = vpop.f32.mrf.mxu2 }
 0x192   : > { %v784_v23 = vpack.c.bf16 %v766_v22, %v766_v22  ;;  %1036 = vmatmul.bf16.gmra.mxu1 %v820_v20 }
 0x194   : > { %v816_v25 = vunpack.c.l.b16 %v784_v23 }
 0x196   : > { %v824_v26 = vpack.c.b16 %v816_v25, %v815_v24 }
 0x198   : > { %1056 = vmatmul.bf16.gmra.mxu3 %v824_v26 }
 0x199   : > { %v4494_v27 = vpop.f32.mrf.mxu2 }
 0x1a1   : > { %v4496_v28 = vpop.f32.mrf.mxu2 }
 0x1a9   : > { %v4498_v29 = vpop.f32.mrf.mxu2 }
 0x1b1   : > { %v4500_v30 = vpop.f32.mrf.mxu2 }
 0x1b9   : > { %v4502_v31 = vpop.f32.mrf.mxu2 }
 0x1c1   : > { %v4504_v32 = vpop.f32.mrf.mxu2 }
 0x1c9   : > { %v1086_v33 = vpop.f32.mrf.mxu2 }
 0x1d1   : > { %v1088_v34 = vpop.f32.mrf.mxu2 }
 0x1d9   : > { %v1091_v36 = vpop.f32.mrf.mxu2 }
 0x1df   : > { %v4506_v47 = vpop.f32.mrf.mxu1 }
 0x1e1   : > { %v1093_v50 = vpop.f32.mrf.mxu2 }
 0x1e7   : > { %v1024_v57 = vpop.f32.mrf.mxu1 }
 0x1e9   : > { %v1096_v62 = vpop.f32.mrf.mxu2 }
 0x1eb   : > { %v1042_v52 = vpop.f32.mrf.mxu3 }
 0x1ec   : > { %v1043_v53 = vadd.f32 %v4511_v51, %v1042_v52 }
 0x1ee   : > { %v1092_v56 = vadd.f32 %v1091_v36, %v1043_v53 }
 0x1ef   : > { %v1027_v63 = vpop.f32.mrf.mxu1 }
 0x1f1   : > { %v1098_v1 = vpop.f32.mrf.mxu2 }
 0x1f3   : > { %v1044_v58 = vpop.f32.mrf.mxu3 }
 0x1f7   : > { %v1029_v3 = vpop.f32.mrf.mxu1 }
 0x1f9   : > { %v1101_v7 = vpop.f32.mrf.mxu2 }
 0x1fb   : > { %v1047_v0 = vpop.f32.mrf.mxu3 }
 0x1fc   : > { %v1048_v53 = vadd.f32 %v4511_v51, %v1047_v0 }
 0x1ff   : > { %v1032_v11 = vpop.f32.mrf.mxu1 }
 0x201   : > { %v1103_v12 = vpop.f32.mrf.mxu2 }
 0x203   : > { %v1049_v5 = vpop.f32.mrf.mxu3 }
 0x204   : > { %v1050_v26 = vadd.f32 %v4511_v51, %v1049_v5 }
 0x206   : > { %v1099_v9 = vadd.f32 %v1098_v1, %v1050_v26 }
 0x207   : > { %v1034_v14 = vpop.f32.mrf.mxu1 }
 0x209   : > { %v1106_v15 = vpop.f32.mrf.mxu2 }
 0x20b   : > { %v1052_v10 = vpop.f32.mrf.mxu3 }
 0x20c   : > { %v1053_v22 = vadd.f32 %v4511_v51, %v1052_v10  ;;  %v1097_v10 = vadd.f32 %v1096_v62, %v1048_v53  ;;  %v4536_v53 = vld [vmem:[#allocation3] sm:$0xff] }
 0x20e   : > { %v1102_v6 = vadd.f32 %v1101_v7, %v1053_v22  ;;  %v1035_v7 = vadd.f32 %v4511_v51, %v1034_v14 }
 0x20f   : > { %v1037_v18 = vpop.f32.mrf.mxu1 }
 0x210   : > { %v1038_v0 = vadd.f32 %v4511_v51, %v1037_v18 }
 0x211   : > { %v1108_v25 = vpop.f32.mrf.mxu2 }
 0x212   : > { %v1087_v62 = vadd.f32 %v1086_v33, %v1038_v0  ;;  %v1023_v33 = vadd.f32 %v4511_v51, %v4506_v47  ;;  %v4548_v47 = vld [vmem:[#allocation3 + $0x28] sm:$0xff]  ;;  %v3987_v0 = vld [vmem:[%s5318_s6 + $0x60] sm:$0xff] }
 0x213   : > { %v1054_v13 = vpop.f32.mrf.mxu3 }
 0x214   : > { %v1055_v19 = vadd.f32 %v4511_v51, %v1054_v13 }
 0x216   : > { %v1104_v36 = vadd.f32 %v1103_v12, %v1055_v19  ;;  %v1122_v12 = vmax.f32 %v1099_v9, 0.0  ;;  %v1121_v19 = vmax.f32 %v1097_v10, 0.0  ;;  %v3980_v10 = vld [vmem:[%s5318_s6 + $0x28] sm:$0xff] }
 0x217   : > { %v1039_v4 = vpop.f32.mrf.mxu1 }
 0x218   : > { %v1124_v8 = vmax.f32 %v1104_v36, 0.0 }
 0x21b   : > { %v1057_v16 = vpop.f32.mrf.mxu3 }
 0x21c   : > { %v1058_v17 = vadd.f32 %v4511_v51, %v1057_v16  ;;  %v1045_v16 = vadd.f32 %v4511_v51, %v1044_v58  ;;  %v1132_v58 = vpack.c.bf16 %v1122_v12, %v1121_v19  ;;  %v3988_v12 = vld [vmem:[%s5318_s6 + $0x68] sm:$0xff]  ;;  %v3977_v19 = vld [vmem:[%s5318_s6 + $0x10] sm:$0xff] }
 0x21e   : > { %v1107_v23 = vadd.f32 %v1106_v15, %v1058_v17  ;;  %v1123_v15 = vmax.f32 %v1102_v6, 0.0  ;;  %v1094_v17 = vadd.f32 %v1093_v50, %v1045_v16  ;;  %v1030_v6 = vadd.f32 %v4511_v51, %v1029_v3  ;;  %v3981_v16 = vld [vmem:[%s5318_s6 + $0x30] sm:$0xff] }
 0x21f   : > { %v1028_v50 = vadd.f32 %v4511_v51, %v1027_v63 }
 0x220   : > { %v1125_v37 = vmax.f32 %v1107_v23, 0.0  ;;  %v1133_v5 = vpack.c.bf16 %v1124_v8, %v1123_v15  ;;  %v1120_v1 = vmax.f32 %v1094_v17, 0.0  ;;  %v1117_v23 = vmax.f32 %v1087_v62, 0.0  ;;  %v3990_v15 = vld [vmem:[%s5318_s6 + $0x78] sm:$0xff]  ;;  %v3979_v17 = vld [vmem:[%s5318_s6 + $0x20] sm:$0xff] }
 0x221   : > { %v1077_v3 = vadd.f32 %v4498_v29, %v1028_v50  ;;  %v4539_v29 = vld [vmem:[#allocation3 + $0x18] sm:$0xff]  ;;  %1477 = vmatpush.bf16.msrb.mxu1 %v3990_v15 }
 0x222   : > { %v4603_v62 = vld [vmem:[#allocation3 + $0x38] sm:$0xff] }
 0x223   : > { %v1059_v20 = vpop.f32.mrf.mxu3  ;;  %v1113_v26 = vmax.f32 %v1077_v3, 0.0 }
 0x224   : > { %v1060_v24 = vadd.f32 %v4511_v51, %v1059_v20  ;;  %v1040_v20 = vadd.f32 %v4511_v51, %v1039_v4  ;;  %v1084_v4 = vadd.f32 %v4504_v32, %v1035_v7  ;;  %v4584_v7 = vld [vmem:[#allocation3 + $0x30] sm:$0xff] }
 0x226   : > { %v1109_v52 = vadd.f32 %v1108_v25, %v1060_v24  ;;  %v1089_v22 = vadd.f32 %v1088_v34, %v1040_v20  ;;  %v1025_v34 = vadd.f32 %v4511_v51, %v1024_v57  ;;  %v3989_v20 = vld [vmem:[%s5318_s6 + $0x70] sm:$0xff] }
 0x227   : > { %1478 = vmatpush.bf16.msrb.mxu1 %v3989_v20 }
 0x228   : > { %v1126_v21 = vmax.f32 %v1109_v52, 0.0  ;;  %v1118_v9 = vmax.f32 %v1089_v22, 0.0  ;;  %v1074_v24 = vadd.f32 %v4496_v28, %v1025_v34  ;;  %v4542_v28 = vld [vmem:[#allocation3 + $0x10] sm:$0xff]  ;;  %v3976_v22 = vld [vmem:[%s5318_s6 + $0x8] sm:$0xff] }
 0x22a   : > { %v1134_v13 = vpack.c.bf16 %v1126_v21, %v1125_v37  ;;  %v1119_v21 = vmax.f32 %v1092_v56, 0.0  ;;  %v1033_v37 = vadd.f32 %v4511_v51, %v1032_v11  ;;  %v1079_v56 = vadd.f32 %v4500_v30, %v1030_v6  ;;  %v3982_v51 = vld [vmem:[%s5318_s6 + $0x38] sm:$0xff]  ;;  %v3983_v6 = vld [vmem:[%s5318_s6 + $0x40] sm:$0xff] }
 0x22b   : > { %v1130_v14 = vpack.c.bf16 %v1118_v9, %v1117_v23  ;;  %v1116_v11 = vmax.f32 %v1084_v4, 0.0  ;;  %v1112_v36 = vmax.f32 %v1074_v24, 0.0  ;;  %1428 = vmatpush.bf16.msrb.mxu0 %v3982_v51  ;;  %1479 = vmatpush.bf16.msrb.mxu1 %v3988_v12 }
 0x22c   : > { %1183 = vmatpush.bf16.msrb.mxu3 %v1134_v13  ;;  %v1131_v8 = vpack.c.bf16 %v1120_v1, %v1119_v21  ;;  %v1082_v18 = vadd.f32 %v4502_v31, %v1033_v37  ;;  %v1114_v25 = vmax.f32 %v1079_v56, 0.0  ;;  %v1072_v31 = vadd.f32 %v4494_v27, %v1023_v33  ;;  %v4545_v27 = vld [vmem:[#allocation3 + $0x20] sm:$0xff]  ;;  %v4557_v13 = vld [vmem:[#allocation3 + $0x8] sm:$0xff]  ;;  %v3985_v21 = vld [vmem:[%s5318_s6 + $0x50] sm:$0xff] }
 0x22d   : > { %v3975_v1 = vld [vmem:[%s5318_s6] sm:$0xff]  ;;  %v3984_v37 = vld [vmem:[%s5318_s6 + $0x48] sm:$0xff] }
 0x22e   : > { %v1115_v32 = vmax.f32 %v1082_v18, 0.0  ;;  %v1128_v57 = vpack.c.bf16 %v1114_v25, %v1113_v26  ;;  %v1111_v30 = vmax.f32 %v1072_v31, 0.0 }
 0x22f   : > { %1429 = vmatpush.bf16.msrb.mxu0 %v3981_v16  ;;  %1480 = vmatpush.bf16.msrb.mxu1 %v3987_v0 }
 0x230   : > { %1184 = vmatpush.bf16.msrb.mxu3 %v1133_v5  ;;  %v1129_v63 = vpack.c.bf16 %v1116_v11, %v1115_v32  ;;  %v1127_v52 = vpack.c.bf16 %v1112_v36, %v1111_v30  ;;  %v3978_v5 = vld [vmem:[%s5318_s6 + $0x18] sm:$0xff] }
 0x233   : > { %1430 = vmatpush.bf16.msrb.mxu0 %v3980_v10 }
 0x234   : > { %1185 = vmatpush.bf16.msrb.mxu3 %v1132_v58  ;;  %v3986_v58 = vld [vmem:[%s5318_s6 + $0x58] sm:$0xff] }
 0x235   : > { %1481 = vmatpush.bf16.msrb.mxu1 %v3986_v58 }
 0x237   : > { %1431 = vmatpush.bf16.msrb.mxu0 %v3979_v17 }
 0x238   : > { %1186 = vmatpush.bf16.msrb.mxu3 %v1131_v8 }
 0x239   : > { %1482 = vmatpush.bf16.msrb.mxu1 %v3985_v21 }
 0x23b   : > { %1432 = vmatpush.bf16.msrb.mxu0 %v3978_v5 }
 0x23c   : > { %1187 = vmatpush.bf16.msrb.mxu3 %v1130_v14 }
 0x23d   : > { %1483 = vmatpush.bf16.msrb.mxu1 %v3984_v37 }
 0x23f   : > { %1433 = vmatpush.bf16.msrb.mxu0 %v3977_v19 }
 0x240   : > { %1188 = vmatpush.bf16.msrb.mxu3 %v1129_v63 }
 0x241   : > { %1484 = vmatpush.bf16.msrb.mxu1 %v3983_v6 }
 0x243   : > { %1434 = vmatpush.bf16.msrb.mxu0 %v3976_v22 }
 0x244   : > { %1189 = vmatpush.bf16.msrb.mxu3 %v1128_v57 }
 0x247   : > { %1435 = vmatpush.bf16.msrb.mxu0 %v3975_v1 }
 0x248   : > { %1190 = vmatpush.bf16.msrb.mxu3 %v1127_v52 }
 0x24a   : > { %1436 = vmatmul.bf16.vlgmr.msrb.gmra.mxu0 %v4386_v44 }
 0x24b   : > { %1191 = vmatmul.bf16.vlgmr.msrb.gmra.mxu3 %v4536_v53 }
 0x25a   : > { %1441 = vmatmul.bf16.gmra.mxu0 %v4381_v43 }
 0x25b   : > { %1196 = vmatmul.bf16.gmra.mxu3 %v4539_v29 }
 0x26a   : > { %1446 = vmatmul.bf16.gmra.mxu0 %v4376_v42 }
 0x26b   : > { %1201 = vmatmul.bf16.gmra.mxu3 %v4542_v28 }
 0x27a   : > { %1451 = vmatmul.bf16.gmra.mxu0 %v4371_v41 }
 0x27b   : > { %1206 = vmatmul.bf16.gmra.mxu3 %v4545_v27 }
 0x28a   : > { %1456 = vmatmul.bf16.gmra.mxu0 %v4366_v40 }
 0x28b   : > { %1211 = vmatmul.bf16.gmra.mxu3 %v4548_v47 }
 0x29a   : > { %1461 = vmatmul.bf16.gmra.mxu0 %v4361_v35 }
 0x29b   : > { %1216 = vmatmul.bf16.gmra.mxu3 %v4557_v13 }
 0x2aa   : > { %1466 = vmatmul.bf16.gmra.mxu0 %v4356_v39 }
 0x2ab   : > { %1221 = vmatmul.bf16.gmra.mxu3 %v4584_v7 }
 0x2ba   : > { %1471 = vmatmul.bf16.gmra.mxu0 %v4351_v38 }
 0x2bb   : > { %1226 = vmatmul.bf16.gmra.mxu3 %v4603_v62 }
 0x2ce   : > { %v1192_v4 = vpop.f32.mrf.mxu3 }
 0x2cf   : > { %v1232_v44 = vpack.c.bf16 %v1192_v4, %v1192_v4 }
 0x2d1   : > { %v1264_v50 = vunpack.c.l.b16 %v1232_v44  ;;  %v1437_v44 = vpop.f32.mrf.mxu0 }
 0x2d6   : > { %v1194_v8 = vpop.f32.mrf.mxu3 }
 0x2d7   : > { %v1233_v9 = vpack.c.bf16 %v1194_v8, %v1194_v8 }
 0x2d9   : > { %v1265_v18 = vunpack.c.l.b16 %v1233_v9 }
 0x2db   : > { %v1280_v23 = vpack.c.b16 %v1265_v18, %v1264_v50 }
 0x2dd   : > { %1485 = vmatmul.bf16.vlgmr.msrb.gmra.mxu1 %v1280_v23  ;;  %v4616_v23 = vpop.f32.mrf.mxu0 }
 0x2de   : > { %v1197_v34 = vpop.f32.mrf.mxu3 }
 0x2df   : > { %v1234_v56 = vpack.c.bf16 %v1197_v34, %v1197_v34 }
 0x2e1   : > { %v1266_v33 = vunpack.c.l.b16 %v1234_v56 }
 0x2e6   : > { %v1199_v14 = vpop.f32.mrf.mxu3 }
 0x2e7   : > { %v1235_v11 = vpack.c.bf16 %v1199_v14, %v1199_v14 }
 0x2e9   : > { %v1267_v3 = vunpack.c.l.b16 %v1235_v11 }
 0x2eb   : > { %v1281_v32 = vpack.c.b16 %v1267_v3, %v1266_v33  ;;  %v1442_v3 = vpop.f32.mrf.mxu0 }
 0x2ed   : > { %1490 = vmatmul.bf16.gmra.mxu1 %v1281_v32  ;;  %v4621_v32 = vld [vmem:[%s5319_s7] ss:$0 sm:$0xff] }
 0x2ee   : > { %v1202_v43 = vpop.f32.mrf.mxu3 }
 0x2ef   : > { %v1236_v42 = vpack.c.bf16 %v1202_v43, %v1202_v43 }
 0x2f1   : > { %v1268_v25 = vunpack.c.l.b16 %v1236_v42  ;;  %v1438_v42 = vadd.f32 %v4621_v32, %v1437_v44 }
 0x2f3   : > { %v4623_v43 = vpop.f32.mrf.mxu0 }
 0x2f6   : > { %v1204_v24 = vpop.f32.mrf.mxu3 }
 0x2f7   : > { %v1237_v63 = vpack.c.bf16 %v1204_v24, %v1204_v24 }
 0x2f9   : > { %v1269_v31 = vunpack.c.l.b16 %v1237_v63 }
 0x2fb   : > { %v1282_v26 = vpack.c.b16 %v1269_v31, %v1268_v25  ;;  %v1447_v25 = vpop.f32.mrf.mxu0 }
 0x2fd   : > { %1495 = vmatmul.bf16.gmra.mxu1 %v1282_v26  ;;  %v1443_v26 = vadd.f32 %v4621_v32, %v1442_v3 }
 0x2fe   : > { %v1207_v57 = vpop.f32.mrf.mxu3 }
 0x2ff   : > { %v1238_v41 = vpack.c.bf16 %v1207_v57, %v1207_v57 }
 0x301   : > { %v1270_v52 = vunpack.c.l.b16 %v1238_v41 }
 0x303   : > { %v4631_v41 = vpop.f32.mrf.mxu0 }
 0x306   : > { %v1209_v36 = vpop.f32.mrf.mxu3 }
 0x307   : > { %v1239_v30 = vpack.c.bf16 %v1209_v36, %v1209_v36 }
 0x309   : > { %v1271_v51 = vunpack.c.l.b16 %v1239_v30 }
 0x30b   : > { %v1283_v16 = vpack.c.b16 %v1271_v51, %v1270_v52  ;;  %v1452_v52 = vpop.f32.mrf.mxu0  ;;  %v1448_v51 = vadd.f32 %v4621_v32, %v1447_v25 }
 0x30d   : > { %1500 = vmatmul.bf16.gmra.mxu1 %v1283_v16 }
 0x30e   : > { %v1212_v10 = vpop.f32.mrf.mxu3 }
 0x30f   : > { %v1240_v40 = vpack.c.bf16 %v1212_v10, %v1212_v10 }
 0x311   : > { %v1272_v20 = vunpack.c.l.b16 %v1240_v40 }
 0x313   : > { %v1454_v40 = vpop.f32.mrf.mxu0 }
 0x316   : > { %v1214_v15 = vpop.f32.mrf.mxu3 }
 0x317   : > { %v1241_v17 = vpack.c.bf16 %v1214_v15, %v1214_v15 }
 0x319   : > { %v1273_v5 = vunpack.c.l.b16 %v1241_v17  ;;  %v1453_v17 = vadd.f32 %v4621_v32, %v1452_v52 }
 0x31b   : > { %v1284_v12 = vpack.c.b16 %v1273_v5, %v1272_v20  ;;  %v1457_v20 = vpop.f32.mrf.mxu0 }
 0x31d   : > { %1505 = vmatmul.bf16.gmra.mxu1 %v1284_v12 }
 0x31e   : > { %v1217_v19 = vpop.f32.mrf.mxu3 }
 0x31f   : > { %v1242_v35 = vpack.c.bf16 %v1217_v19, %v1217_v19 }
 0x321   : > { %v1274_v58 = vunpack.c.l.b16 %v1242_v35 }
 0x323   : > { %v1459_v35 = vpop.f32.mrf.mxu0 }
 0x326   : > { %v1219_v0 = vpop.f32.mrf.mxu3 }
 0x327   : > { %v1243_v22 = vpack.c.bf16 %v1219_v0, %v1219_v0  ;;  %v1458_v0 = vadd.f32 %v4621_v32, %v1457_v20 }
 0x329   : > { %v1275_v1 = vunpack.c.l.b16 %v1243_v22 }
 0x32b   : > { %v1285_v21 = vpack.c.b16 %v1275_v1, %v1274_v58  ;;  %v1462_v1 = vpop.f32.mrf.mxu0 }
 0x32c   : > { %v1463_v3 = vadd.f32 %v4621_v32, %v1462_v1 }
 0x32d   : > { %1510 = vmatmul.bf16.gmra.mxu1 %v1285_v21 }
 0x32e   : > { %v1222_v37 = vpop.f32.mrf.mxu3 }
 0x32f   : > { %v1244_v6 = vpack.c.bf16 %v1222_v37, %v1222_v37 }
 0x331   : > { %v1276_v8 = vunpack.c.l.b16 %v1244_v6 }
 0x333   : > { %v1464_v37 = vpop.f32.mrf.mxu0 }
 0x336   : > { %v1224_v39 = vpop.f32.mrf.mxu3 }
 0x337   : > { %v1245_v4 = vpack.c.bf16 %v1224_v39, %v1224_v39 }
 0x339   : > { %v1277_v9 = vunpack.c.l.b16 %v1245_v4 }
 0x33b   : > { %v1286_v50 = vpack.c.b16 %v1277_v9, %v1276_v8  ;;  %v1467_v39 = vpop.f32.mrf.mxu0 }
 0x33d   : > { %1515 = vmatmul.bf16.gmra.mxu1 %v1286_v50 }
 0x33e   : > { %v1227_v18 = vpop.f32.mrf.mxu3 }
 0x33f   : > { %v1246_v38 = vpack.c.bf16 %v1227_v18, %v1227_v18 }
 0x341   : > { %v1278_v14 = vunpack.c.l.b16 %v1246_v38 }
 0x343   : > { %v1469_v44 = vpop.f32.mrf.mxu0 }
 0x346   : > { %v1229_v34 = vpop.f32.mrf.mxu3 }
 0x347   : > { %v1247_v56 = vpack.c.bf16 %v1229_v34, %v1229_v34  ;;  %v1468_v34 = vadd.f32 %v4621_v32, %v1467_v39 }
 0x349   : > { %v1279_v11 = vunpack.c.l.b16 %v1247_v56  ;;  %v1470_v56 = vadd.f32 %v4621_v32, %v1469_v44 }
 0x34b   : > { %v1287_v33 = vpack.c.b16 %v1279_v11, %v1278_v14  ;;  %v1472_v50 = vpop.f32.mrf.mxu0 }
 0x34c   : > { %v1473_v18 = vadd.f32 %v4621_v32, %v1472_v50 }
 0x34d   : > { %1520 = vmatmul.bf16.gmra.mxu1 %v1287_v33 }
 0x353   : > { %v1474_v11 = vpop.f32.mrf.mxu0 }
 0x354   : > { %v1475_v25 = vadd.f32 %v4621_v32, %v1474_v11 }
 0x35a   : > { %v1486_v24 = vpop.f32.mrf.mxu1 }
 0x35b   : > { %v4626_v63 = vadd.f32 %v1486_v24, %v1438_v42  ;;  %v1465_v42 = vadd.f32 %v4621_v32, %v1464_v37  ;;  %v1455_v37 = vadd.f32 %v4621_v32, %v1454_v40 }
 0x362   : > { %v4628_v31 = vpop.f32.mrf.mxu1 }
 0x36a   : > { %v1491_v57 = vpop.f32.mrf.mxu1 }
 0x36b   : > { %v4633_v36 = vadd.f32 %v1491_v57, %v1443_v26 }
 0x372   : > { %v4635_v30 = vpop.f32.mrf.mxu1 }
 0x37a   : > { %v1496_v16 = vpop.f32.mrf.mxu1 }
 0x37b   : > { %v4638_v10 = vadd.f32 %v1496_v16, %v1448_v51 }
 0x382   : > { %v1498_v15 = vpop.f32.mrf.mxu1 }
 0x38a   : > { %v1501_v5 = vpop.f32.mrf.mxu1 }
 0x38b   : > { %v4641_v12 = vadd.f32 %v1501_v5, %v1453_v17  ;;  %v1460_v17 = vadd.f32 %v4621_v32, %v1459_v35  ;;  %v1450_v35 = vadd.f32 %v4621_v32, %v4631_v41 }
 0x392   : > { %v1503_v19 = vpop.f32.mrf.mxu1 }
 0x39a   : > { %v1506_v22 = vpop.f32.mrf.mxu1 }
 0x39b   : > { %v1507_v58 = vadd.f32 %v1506_v22, %v1458_v0 }
 0x3a2   : > { %v1508_v21 = vpop.f32.mrf.mxu1 }
 0x3a3   : > { %v1509_v39 = vadd.f32 %v1508_v21, %v1460_v17  ;;  %v1440_v17 = vadd.f32 %v4621_v32, %v4616_v23 }
 0x3aa   : > { %v1511_v6 = vpop.f32.mrf.mxu1 }
 0x3ab   : > { %v1512_v20 = vadd.f32 %v1511_v6, %v1463_v3  ;;  %v1534_v6 = vmax.f32 %v1507_v58, 0.0  ;;  %v1499_v3 = vadd.f32 %v1498_v15, %v1450_v35 }
 0x3ad   : > { %v1531_v58 = vmax.f32 %v1499_v3, 0.0  ;;  %v3997_v3 = vld [vmem:[%s5316_s4 + $0xb0] sm:$0xff] }
 0x3b2   : > { %v1513_v4 = vpop.f32.mrf.mxu1 }
 0x3b3   : > { %v1514_v52 = vadd.f32 %v1513_v4, %v1465_v42  ;;  %v1535_v4 = vmax.f32 %v1509_v39, 0.0 }
 0x3b5   : > { %v1537_v44 = vmax.f32 %v1514_v52, 0.0  ;;  %v1551_v42 = vpack.c.bf16 %v1535_v4, %v1535_v4 }
 0x3ba   : > { %v1516_v8 = vpop.f32.mrf.mxu1 }
 0x3bb   : > { %v1517_v24 = vadd.f32 %v1516_v8, %v1468_v34  ;;  %v1536_v8 = vmax.f32 %v1512_v20, 0.0  ;;  %v1504_v34 = vadd.f32 %v1503_v19, %v1455_v37  ;;  %v1445_v19 = vadd.f32 %v4621_v32, %v4623_v43 }
 0x3bc   : > { %v1530_v20 = vmax.f32 %v4638_v10, 0.0 }
 0x3bd   : > { %v1538_v5 = vmax.f32 %v1517_v24, 0.0  ;;  %v1552_v21 = vpack.c.bf16 %v1536_v8, %v1536_v8  ;;  %v1533_v40 = vmax.f32 %v1504_v34, 0.0  ;;  %v1494_v41 = vadd.f32 %v4635_v30, %v1445_v19  ;;  %v4007_v19 = vld [vmem:[%s5318_s6 + $0x80] sm:$0xff] }
 0x3be   : > { %v1526_v8 = vmax.f32 %v4626_v63, 0.0  ;;  %v4014_v63 = vld [vmem:[%s5318_s6 + $0xb8] sm:$0xff] }
 0x3bf   : > { %v1554_v50 = vpack.c.bf16 %v1538_v5, %v1538_v5  ;;  %v1584_v52 = vunpack.c.l.b16 %v1552_v21  ;;  %v4013_v21 = vld [vmem:[%s5318_s6 + $0xb0] sm:$0xff] }
 0x3c2   : > { %v1518_v9 = vpop.f32.mrf.mxu1 }
 0x3c3   : > { %v1519_v33 = vadd.f32 %v1518_v9, %v1470_v56  ;;  %v1553_v56 = vpack.c.bf16 %v1537_v44, %v1537_v44  ;;  %v1528_v44 = vmax.f32 %v4633_v36, 0.0  ;;  %v1542_v36 = vpack.c.bf16 %v1526_v8, %v1526_v8  ;;  %v5334_v8 = vld [vmem:[#allocation5_spill] sm:$0xff] }
 0x3c5   : > { %v1539_v51 = vmax.f32 %v1519_v33, 0.0  ;;  %v1586_v33 = vunpack.c.l.b16 %v1554_v50  ;;  %v1585_v24 = vunpack.c.l.b16 %v1553_v56  ;;  %v1544_v50 = vpack.c.bf16 %v1528_v44, %v1528_v44 }
 0x3c6   : > { %v1574_v35 = vunpack.c.l.b16 %v1542_v36 }
 0x3c7   : > { %v1555_v9 = vpack.c.bf16 %v1539_v51, %v1539_v51  ;;  %v1549_v51 = vpack.c.bf16 %v1533_v40, %v1533_v40  ;;  %v4664_v15 = vpack.c.b16 %v1585_v24, %v1584_v52  ;;  %v1576_v4 = vunpack.c.l.b16 %v1544_v50  ;;  %v4008_v40 = vld [vmem:[%s5318_s6 + $0x88] sm:$0xff]  ;;  %v3994_v52 = vld [vmem:[%s5316_s4 + $0x98] sm:$0xff] }
 0x3c8   : > { %v4004_v24 = vld [vmem:[%s5316_s4 + $0xe8] sm:$0xff] }
 0x3c9   : > { %v1581_v39 = vunpack.c.l.b16 %v1549_v51  ;;  %v4001_v51 = vld [vmem:[%s5316_s4 + $0xd0] sm:$0xff] }
 0x3ca   : > { %v1521_v38 = vpop.f32.mrf.mxu1 }
 0x3cb   : > { %v1522_v14 = vadd.f32 %v1521_v38, %v1473_v18 }
 0x3cd   : > { %v1540_v26 = vmax.f32 %v1522_v14, 0.0  ;;  %v1587_v14 = vunpack.c.l.b16 %v1555_v9  ;;  %v1546_v9 = vpack.c.bf16 %v1530_v20, %v1530_v20  ;;  %v3999_v20 = vld [vmem:[%s5316_s4 + $0xc0] sm:$0xff] }
 0x3cf   : > { %v1556_v0 = vpack.c.bf16 %v1540_v26, %v1540_v26  ;;  %v1532_v26 = vmax.f32 %v4641_v12, 0.0  ;;  %v1489_v12 = vadd.f32 %v4628_v31, %v1440_v17  ;;  %v1578_v31 = vunpack.c.l.b16 %v1546_v9  ;;  %v3991_v17 = vld [vmem:[%s5316_s4 + $0x80] sm:$0xff] }
 0x3d0   : > { %v5333_v9 = vld [vmem:[#allocation4_spill] sm:$0xff] }
 0x3d1   : > { %v1588_v18 = vunpack.c.l.b16 %v1556_v0  ;;  %v1548_v5 = vpack.c.bf16 %v1532_v26, %v1532_v26  ;;  %v1529_v0 = vmax.f32 %v1494_v41, 0.0  ;;  %v1527_v23 = vmax.f32 %v1489_v12, 0.0  ;;  %v3995_v26 = vld [vmem:[%s5316_s4 + $0xa0] sm:$0xff]  ;;  %v4002_v41 = vld [vmem:[%s5316_s4 + $0xd8] sm:$0xff] }
 0x3d2   : > { %v1523_v57 = vpop.f32.mrf.mxu1 }
 0x3d3   : > { %v1524_v16 = vadd.f32 %v1523_v57, %v1475_v25  ;;  %v4657_v25 = vpack.c.b16 %v1587_v14, %v1586_v33  ;;  %v1550_v57 = vpack.c.bf16 %v1534_v6, %v1534_v6  ;;  %v1545_v32 = vpack.c.bf16 %v1529_v0, %v1529_v0  ;;  %v4009_v33 = vld [vmem:[%s5318_s6 + $0x90] sm:$0xff] }
 0x3d5   : > { %v1541_v22 = vmax.f32 %v1524_v16, 0.0  ;;  %v1583_v16 = vunpack.c.l.b16 %v1551_v42  ;;  %v1582_v43 = vunpack.c.l.b16 %v1550_v57  ;;  %v3996_v42 = vld [vmem:[%s5316_s4 + $0xa8] sm:$0xff]  ;;  %v4003_v57 = vld [vmem:[%s5316_s4 + $0xe0] sm:$0xff] }
 0x3d7   : > { %v1557_v1 = vpack.c.bf16 %v1541_v22, %v1541_v22  ;;  %v1547_v22 = vpack.c.bf16 %v1531_v58, %v1531_v58  ;;  %v4671_v30 = vpack.c.b16 %v1583_v16, %v1582_v43  ;;  %v3993_v58 = vld [vmem:[%s5316_s4 + $0x90] sm:$0xff]  ;;  %v4000_v16 = vld [vmem:[%s5316_s4 + $0xc8] sm:$0xff] }
 0x3d9   : > { %v1589_v38 = vunpack.c.l.b16 %v1557_v1  ;;  %v1580_v1 = vunpack.c.l.b16 %v1548_v5  ;;  %v1579_v10 = vunpack.c.l.b16 %v1547_v22 }
 0x3db   : > { %v4652_v11 = vpack.c.b16 %v1589_v38, %v1588_v18  ;;  %v4675_v37 = vpack.c.b16 %v1581_v39, %v1580_v1  ;;  %v1543_v18 = vpack.c.bf16 %v1527_v23, %v1527_v23  ;;  %v1577_v38 = vunpack.c.l.b16 %v1545_v32 }
 0x3dc   : > { %v4679_v34 = vpack.c.b16 %v1579_v10, %v1578_v31 }
 0x3dd   : > { %1606 = vmatpush.bf16.msra.mxu2 %v4652_v11  ;;  %v1575_v56 = vunpack.c.l.b16 %v1543_v18  ;;  %v4682_v14 = vpack.c.b16 %v1577_v38, %v1576_v4 }
 0x3df   : > { %v1590_v6 = vpack.c.b16 %v1575_v56, %v1574_v35 }
 0x3e1   : > { %1607 = vmatpush.bf16.msra.mxu2 %v4657_v25 }
 0x3e5   : > { %1608 = vmatpush.bf16.msra.mxu2 %v4664_v15 }
 0x3e9   : > { %1609 = vmatpush.bf16.msra.mxu2 %v4671_v30 }
 0x3ed   : > { %1610 = vmatpush.bf16.msra.mxu2 %v4675_v37 }
 0x3f1   : > { %1611 = vmatpush.bf16.msra.mxu2 %v4679_v34 }
 0x3f5   : > { %1612 = vmatpush.bf16.msra.mxu2 %v4682_v14 }
 0x3f9   : > { %1613 = vmatpush.bf16.msra.mxu2 %v1590_v6 }
 0x3fc   : > { %1614 = vmatmul.bf16.vlgmr.msra.gmra.mxu2 %v4388_v45  ;;  %v4012_v45 = vld [vmem:[%s5318_s6 + $0xa8] sm:$0xff] }
 0x3fd   : > { %2222 = vmatpush.bf16.msrb.mxu2 %v4014_v63 }
 0x401   : > { %2223 = vmatpush.bf16.msrb.mxu2 %v4013_v21 }
 0x405   : > { %2224 = vmatpush.bf16.msrb.mxu2 %v4012_v45 }
 0x40c   : > { %1619 = vmatmul.bf16.gmra.mxu2 %v4399_v48  ;;  %v4011_v48 = vld [vmem:[%s5318_s6 + $0xa0] sm:$0xff] }
 0x40d   : > { %2225 = vmatpush.bf16.msrb.mxu2 %v4011_v48 }
 0x41c   : > { %1624 = vmatmul.bf16.gmra.mxu2 %v4417_v54  ;;  %v3998_v54 = vld [vmem:[%s5316_s4 + $0xb8] sm:$0xff] }
 0x41d   : > { %1853 = vmatpush.bf16.msra.mxu3 %v3998_v54 }
 0x421   : > { %1854 = vmatpush.bf16.msra.mxu3 %v3997_v3 }
 0x425   : > { %1855 = vmatpush.bf16.msra.mxu3 %v3996_v42  ;;  %v5337_v42 = vld [vmem:[#allocation8_spill] sm:$0xff] }
 0x429   : > { %1856 = vmatpush.bf16.msra.mxu3 %v3995_v26 }
 0x42c   : > { %1629 = vmatmul.bf16.gmra.mxu2 %v4432_v59  ;;  %v4006_v59 = vld [vmem:[%s5316_s4 + $0xf8] sm:$0xff] }
 0x42d   : > { %1902 = vmatpush.bf16.msra.mxu0 %v4006_v59  ;;  %1857 = vmatpush.bf16.msra.mxu3 %v3994_v52 }
 0x431   : > { %1858 = vmatpush.bf16.msra.mxu3 %v3993_v58  ;;  %v5338_v58 = vld [vmem:[#allocation9_spill] sm:$0xff] }
 0x43c   : > { %1634 = vmatmul.bf16.gmra.mxu2 %v4390_v46  ;;  %v4010_v46 = vld [vmem:[%s5318_s6 + $0x98] sm:$0xff] }
 0x43d   : > { %2226 = vmatpush.bf16.msrb.mxu2 %v4010_v46  ;;  %v5336_v46 = vld [vmem:[#allocation7_spill] sm:$0xff] }
 0x441   : > { %2227 = vmatpush.bf16.msrb.mxu2 %v4009_v33 }
 0x445   : > { %2228 = vmatpush.bf16.msrb.mxu2 %v4008_v40 }
 0x449   : > { %2229 = vmatpush.bf16.msrb.mxu2 %v4007_v19 }
 0x44c   : > { %1639 = vmatmul.bf16.gmra.mxu2 %v4401_v49  ;;  %v4005_v49 = vld [vmem:[%s5316_s4 + $0xf0] sm:$0xff] }
 0x44d   : > { %1903 = vmatpush.bf16.msra.mxu0 %v4005_v49 }
 0x451   : > { %1904 = vmatpush.bf16.msra.mxu0 %v4004_v24 }
 0x455   : > { %1905 = vmatpush.bf16.msra.mxu0 %v4003_v57 }
 0x459   : > { %1906 = vmatpush.bf16.msra.mxu0 %v4002_v41 }
 0x45c   : > { %1644 = vmatmul.bf16.gmra.mxu2 %v4419_v55  ;;  %v3992_v55 = vld [vmem:[%s5316_s4 + $0x88] sm:$0xff] }
 0x45d   : > { %1907 = vmatpush.bf16.msra.mxu0 %v4001_v51  ;;  %1859 = vmatpush.bf16.msra.mxu3 %v3992_v55 }
 0x461   : > { %1908 = vmatpush.bf16.msra.mxu0 %v4000_v16  ;;  %1860 = vmatpush.bf16.msra.mxu3 %v3991_v17 }
 0x465   : > { %1909 = vmatpush.bf16.msra.mxu0 %v3999_v20 }
 0x468   : > { %1910 = vmatmul.bf16.vlgmr.msra.gmra.mxu0 %v4439_v61 }
 0x46c   : > { %1649 = vmatmul.bf16.gmra.mxu2 %v4434_v60 }
 0x478   : > { %1915 = vmatmul.bf16.gmra.mxu0 %v4455_v2 }
 0x47c   : > { %2230 = vmatmul.bf16.vlgmr.msrb.gmra.mxu2 %v1590_v6 }
 0x47f   : > { %v1615_v5 = vpop.f32.mrf.mxu2 }
 0x480   : > { %v1655_v43 = vpack.c.bf16 %v1615_v5, %v1615_v5 }
 0x482   : > { %v1687_v22 = vunpack.c.l.b16 %v1655_v43 }
 0x487   : > { %v1617_v12 = vpop.f32.mrf.mxu2 }
 0x488   : > { %v1656_v0 = vpack.c.bf16 %v1617_v12, %v1617_v12  ;;  %1920 = vmatmul.bf16.gmra.mxu0 %v5333_v9 }
 0x48a   : > { %v1688_v39 = vunpack.c.l.b16 %v1656_v0 }
 0x48c   : > { %v1703_v44 = vpack.c.b16 %v1688_v39, %v1687_v22  ;;  %2235 = vmatmul.bf16.gmra.mxu2 %v4682_v14  ;;  %v5335_v14 = vld [vmem:[#allocation6_spill] sm:$0xff] }
 0x48e   : > { %1861 = vmatmul.bf16.vlgmr.msra.gmra.mxu3 %v1703_v44 }
 0x48f   : > { %v1620_v1 = vpop.f32.mrf.mxu2 }
 0x490   : > { %v1657_v23 = vpack.c.bf16 %v1620_v1, %v1620_v1 }
 0x492   : > { %v1689_v61 = vunpack.c.l.b16 %v1657_v23 }
 0x497   : > { %v1622_v60 = vpop.f32.mrf.mxu2 }
 0x498   : > { %v1658_v32 = vpack.c.bf16 %v1622_v60, %v1622_v60  ;;  %1925 = vmatmul.bf16.gmra.mxu0 %v5334_v8  ;;  %v4785_v60 = vld [vmem:[%s5317_s5 + $0x1] ss:$0 sm:$0xff] }
 0x49a   : > { %v1690_v10 = vunpack.c.l.b16 %v1658_v32 }
 0x49c   : > { %2240 = vmatmul.bf16.gmra.mxu2 %v4679_v34  ;;  %v1704_v2 = vpack.c.b16 %v1690_v10, %v1689_v61 }
 0x49e   : > { %1866 = vmatmul.bf16.gmra.mxu3 %v1704_v2 }
 0x49f   : > { %v1625_v50 = vpop.f32.mrf.mxu2 }
 0x4a0   : > { %v1659_v31 = vpack.c.bf16 %v1625_v50, %v1625_v50 }
 0x4a2   : > { %v1691_v36 = vunpack.c.l.b16 %v1659_v31 }
 0x4a7   : > { %v1627_v18 = vpop.f32.mrf.mxu2 }
 0x4a8   : > { %v1660_v38 = vpack.c.bf16 %v1627_v18, %v1627_v18  ;;  %1930 = vmatmul.bf16.gmra.mxu0 %v5335_v14 }
 0x4aa   : > { %v1692_v4 = vunpack.c.l.b16 %v1660_v38 }
 0x4ac   : > { %2245 = vmatmul.bf16.gmra.mxu2 %v4675_v37  ;;  %v1705_v56 = vpack.c.b16 %v1692_v4, %v1691_v36 }
 0x4ae   : > { %1871 = vmatmul.bf16.gmra.mxu3 %v1705_v56 }
 0x4af   : > { %v1630_v35 = vpop.f32.mrf.mxu2 }
 0x4b0   : > { %v1661_v6 = vpack.c.bf16 %v1630_v35, %v1630_v35 }
 0x4b2   : > { %v1693_v21 = vunpack.c.l.b16 %v1661_v6 }
 0x4b7   : > { %v1632_v63 = vpop.f32.mrf.mxu2 }
 0x4b8   : > { %v1662_v34 = vpack.c.bf16 %v1632_v63, %v1632_v63  ;;  %1935 = vmatmul.bf16.gmra.mxu0 %v5336_v46 }
 0x4ba   : > { %v1694_v45 = vunpack.c.l.b16 %v1662_v34 }
 0x4bc   : > { %2250 = vmatmul.bf16.gmra.mxu2 %v4671_v30  ;;  %v1706_v48 = vpack.c.b16 %v1694_v45, %v1693_v21 }
 0x4be   : > { %1876 = vmatmul.bf16.gmra.mxu3 %v1706_v48 }
 0x4bf   : > { %v1635_v54 = vpop.f32.mrf.mxu2 }
 0x4c0   : > { %v1663_v59 = vpack.c.bf16 %v1635_v54, %v1635_v54 }
 0x4c2   : > { %v1695_v3 = vunpack.c.l.b16 %v1663_v59 }
 0x4c7   : > { %v1637_v33 = vpop.f32.mrf.mxu2 }
 0x4c8   : > { %v1664_v37 = vpack.c.bf16 %v1637_v33, %v1637_v33  ;;  %1940 = vmatmul.bf16.gmra.mxu0 %v5337_v42 }
 0x4ca   : > { %v1696_v49 = vunpack.c.l.b16 %v1664_v37 }
 0x4cc   : > { %2255 = vmatmul.bf16.gmra.mxu2 %v4664_v15  ;;  %v1707_v40 = vpack.c.b16 %v1696_v49, %v1695_v3 }
 0x4ce   : > { %1881 = vmatmul.bf16.gmra.mxu3 %v1707_v40 }
 0x4cf   : > { %v1640_v24 = vpop.f32.mrf.mxu2 }
 0x4d0   : > { %v1665_v19 = vpack.c.bf16 %v1640_v24, %v1640_v24 }
 0x4d2   : > { %v1697_v57 = vunpack.c.l.b16 %v1665_v19 }
 0x4d7   : > { %v1642_v26 = vpop.f32.mrf.mxu2 }
 0x4d8   : > { %v1666_v30 = vpack.c.bf16 %v1642_v26, %v1642_v26  ;;  %1945 = vmatmul.bf16.gmra.mxu0 %v5338_v58 }
 0x4da   : > { %v1698_v52 = vunpack.c.l.b16 %v1666_v30 }
 0x4dc   : > { %2260 = vmatmul.bf16.gmra.mxu2 %v4657_v25  ;;  %v1708_v41 = vpack.c.b16 %v1698_v52, %v1697_v57 }
 0x4de   : > { %1886 = vmatmul.bf16.gmra.mxu3 %v1708_v41 }
 0x4df   : > { %v1645_v51 = vpop.f32.mrf.mxu2 }
 0x4e0   : > { %v1667_v55 = vpack.c.bf16 %v1645_v51, %v1645_v51 }
 0x4e2   : > { %v1699_v17 = vunpack.c.l.b16 %v1667_v55 }
 0x4e5   : > { %v1911_v12 = vpop.f32.mrf.mxu0 }
 0x4e7   : > { %v1647_v16 = vpop.f32.mrf.mxu2 }
 0x4e8   : > { %v1668_v15 = vpack.c.bf16 %v1647_v16, %v1647_v16 }
 0x4ea   : > { %v1700_v20 = vunpack.c.l.b16 %v1668_v15 }
 0x4ec   : > { %2265 = vmatmul.bf16.gmra.mxu2 %v4652_v11  ;;  %v1709_v5 = vpack.c.b16 %v1700_v20, %v1699_v17 }
 0x4ed   : > { %v4780_v1 = vpop.f32.mrf.mxu0 }
 0x4ee   : > { %1891 = vmatmul.bf16.gmra.mxu3 %v1709_v5 }
 0x4ef   : > { %v1650_v43 = vpop.f32.mrf.mxu2 }
 0x4f0   : > { %v1669_v0 = vpack.c.bf16 %v1650_v43, %v1650_v43 }
 0x4f2   : > { %v1701_v25 = vunpack.c.l.b16 %v1669_v0 }
 0x4f5   : > { %v1916_v23 = vpop.f32.mrf.mxu0 }
 0x4f7   : > { %v1652_v22 = vpop.f32.mrf.mxu2 }
 0x4f8   : > { %v1670_v39 = vpack.c.bf16 %v1652_v22, %v1652_v22 }
 0x4fa   : > { %v1702_v44 = vunpack.c.l.b16 %v1670_v39 }
 0x4fc   : > { %v1710_v9 = vpack.c.b16 %v1702_v44, %v1701_v25 }
 0x4fd   : > { %v4788_v61 = vpop.f32.mrf.mxu0 }
 0x4fe   : > { %1896 = vmatmul.bf16.gmra.mxu3 %v1710_v9 }
 0x505   : > { %v1921_v8 = vpop.f32.mrf.mxu0 }
 0x50d   : > { %v1923_v38 = vpop.f32.mrf.mxu0 }
 0x511   : > { %v1862_v11 = vpop.f32.mrf.mxu3 }
 0x512   : > { %v1863_v32 = vadd.f32 %v4785_v60, %v1862_v11 }
 0x514   : > { %v4790_v10 = vadd.f32 %v1911_v12, %v1863_v32 }
 0x515   : > { %v1926_v56 = vpop.f32.mrf.mxu0 }
 0x519   : > { %v4792_v2 = vpop.f32.mrf.mxu3 }
 0x51d   : > { %v1928_v63 = vpop.f32.mrf.mxu0 }
 0x521   : > { %v1867_v50 = vpop.f32.mrf.mxu3 }
 0x522   : > { %v1868_v31 = vadd.f32 %v4785_v60, %v1867_v50 }
 0x524   : > { %v4795_v18 = vadd.f32 %v1916_v23, %v1868_v31 }
 0x525   : > { %v1931_v48 = vpop.f32.mrf.mxu0 }
 0x529   : > { %v1869_v36 = vpop.f32.mrf.mxu3 }
 0x52d   : > { %v1933_v54 = vpop.f32.mrf.mxu0 }
 0x531   : > { %v1872_v4 = vpop.f32.mrf.mxu3 }
 0x532   : > { %v1873_v14 = vadd.f32 %v4785_v60, %v1872_v4 }
 0x534   : > { %v4798_v35 = vadd.f32 %v1921_v8, %v1873_v14 }
 0x535   : > { %v1936_v49 = vpop.f32.mrf.mxu0 }
 0x539   : > { %v1874_v6 = vpop.f32.mrf.mxu3 }
 0x53d   : > { %v1938_v42 = vpop.f32.mrf.mxu0 }
 0x541   : > { %v1877_v34 = vpop.f32.mrf.mxu3 }
 0x542   : > { %v1878_v21 = vadd.f32 %v4785_v60, %v1877_v34  ;;  %v1875_v34 = vadd.f32 %v4785_v60, %v1874_v6  ;;  %v1955_v6 = vmax.f32 %v4798_v35, 0.0 }
 0x544   : > { %v1927_v45 = vadd.f32 %v1926_v56, %v1878_v21 }
 0x545   : > { %v1941_v19 = vpop.f32.mrf.mxu0 }
 0x549   : > { %v1879_v46 = vpop.f32.mrf.mxu3 }
 0x54a   : > { %v1880_v50 = vadd.f32 %v4785_v60, %v1879_v46  ;;  %v1865_v46 = vadd.f32 %v4785_v60, %v4792_v2 }
 0x54c   : > { %v1929_v21 = vadd.f32 %v1928_v63, %v1880_v50  ;;  %v1914_v63 = vadd.f32 %v4780_v1, %v1865_v46  ;;  %v4022_v1 = vld [vmem:[%s5318_s6 + $0xf8] sm:$0xff] }
 0x54d   : > { %v1943_v30 = vpop.f32.mrf.mxu0  ;;  %2271 = vmatpush.bf16.msrb.mxu3 %v4022_v1 }
 0x551   : > { %v1882_v59 = vpop.f32.mrf.mxu3 }
 0x552   : > { %v1883_v33 = vadd.f32 %v4785_v60, %v1882_v59 }
 0x554   : > { %v1932_v37 = vadd.f32 %v1931_v48, %v1883_v33 }
 0x555   : > { %v1946_v52 = vpop.f32.mrf.mxu0 }
 0x556   : > { %v1959_v33 = vmax.f32 %v1932_v37, 0.0 }
 0x559   : > { %v1884_v3 = vpop.f32.mrf.mxu3 }
 0x55a   : > { %v1885_v44 = vadd.f32 %v4785_v60, %v1884_v3  ;;  %v1870_v3 = vadd.f32 %v4785_v60, %v1869_v36  ;;  %v1952_v36 = vmax.f32 %v1914_v63, 0.0 }
 0x55c   : > { %v1934_v31 = vadd.f32 %v1933_v54, %v1885_v44  ;;  %v1919_v54 = vadd.f32 %v4788_v61, %v1870_v3  ;;  %v4021_v61 = vld [vmem:[%s5318_s6 + $0xf0] sm:$0xff] }
 0x55d   : > { %v1948_v20 = vpop.f32.mrf.mxu0  ;;  %2272 = vmatpush.bf16.msrb.mxu3 %v4021_v61 }
 0x55e   : > { %v1960_v48 = vmax.f32 %v1934_v31, 0.0  ;;  %v1954_v37 = vmax.f32 %v1919_v54, 0.0 }
 0x561   : > { %v1887_v40 = vpop.f32.mrf.mxu3 }
 0x562   : > { %v1888_v0 = vadd.f32 %v4785_v60, %v1887_v40  ;;  %v1924_v40 = vadd.f32 %v1923_v38, %v1875_v34  ;;  %v1953_v38 = vmax.f32 %v4795_v18, 0.0 }
 0x564   : > { %v1937_v32 = vadd.f32 %v1936_v49, %v1888_v0  ;;  %v1958_v49 = vmax.f32 %v1929_v21, 0.0 }
 0x566   : > { %v1961_v14 = vmax.f32 %v1937_v32, 0.0 }
 0x569   : > { %v1889_v24 = vpop.f32.mrf.mxu3 }
 0x56a   : > { %v1890_v5 = vadd.f32 %v4785_v60, %v1889_v24  ;;  %v1957_v24 = vmax.f32 %v1927_v45, 0.0  ;;  %v1968_v45 = vpack.c.bf16 %v1954_v37, %v1953_v38  ;;  %v2231_v37 = vpop.f32.mrf.mxu2 }
 0x56c   : > { %v1939_v9 = vadd.f32 %v1938_v42, %v1890_v5  ;;  %v1971_v42 = vpack.c.bf16 %v1960_v48, %v1959_v33 }
 0x56e   : > { %v1962_v4 = vmax.f32 %v1939_v9, 0.0 }
 0x570   : > { %v1972_v59 = vpack.c.bf16 %v1962_v4, %v1961_v14 }
 0x571   : > { %v1892_v26 = vpop.f32.mrf.mxu3 }
 0x572   : > { %v1893_v16 = vadd.f32 %v4785_v60, %v1892_v26  ;;  %v1970_v26 = vpack.c.bf16 %v1958_v49, %v1957_v24 }
 0x574   : > { %v1942_v22 = vadd.f32 %v1941_v19, %v1893_v16  ;;  %v1956_v19 = vmax.f32 %v1924_v40, 0.0 }
 0x576   : > { %v1963_v8 = vmax.f32 %v1942_v22, 0.0 }
 0x579   : > { %v1894_v57 = vpop.f32.mrf.mxu3 }
 0x57a   : > { %v1895_v51 = vadd.f32 %v4785_v60, %v1894_v57  ;;  %v1951_v57 = vmax.f32 %v4790_v10, 0.0 }
 0x57c   : > { %v1944_v43 = vadd.f32 %v1943_v30, %v1895_v51  ;;  %v1969_v30 = vpack.c.bf16 %v1956_v19, %v1955_v6 }
 0x57e   : > { %v1964_v23 = vmax.f32 %v1944_v43, 0.0 }
 0x580   : > { %v1973_v56 = vpack.c.bf16 %v1964_v23, %v1963_v8 }
 0x581   : > { %v1897_v41 = vpop.f32.mrf.mxu3 }
 0x582   : > { %v1898_v58 = vadd.f32 %v4785_v60, %v1897_v41 }
 0x584   : > { %v1947_v15 = vadd.f32 %v1946_v52, %v1898_v58 }
 0x586   : > { %v1965_v39 = vmax.f32 %v1947_v15, 0.0 }
 0x589   : > { %v1899_v55 = vpop.f32.mrf.mxu3 }
 0x58a   : > { %v1900_v17 = vadd.f32 %v4785_v60, %v1899_v55  ;;  %v1967_v60 = vpack.c.bf16 %v1952_v36, %v1951_v57  ;;  %v4851_v57 = vpop.f32.mrf.mxu2 }
 0x58c   : > { %v1949_v12 = vadd.f32 %v1948_v20, %v1900_v17 }
 0x58e   : > { %v1966_v25 = vmax.f32 %v1949_v12, 0.0 }
 0x590   : > { %v1974_v11 = vpack.c.bf16 %v1966_v25, %v1965_v39 }
 0x592   : > { %1975 = vmatpush.bf16.msra.mxu1 %v1974_v11 }
 0x596   : > { %1976 = vmatpush.bf16.msra.mxu1 %v1973_v56 }
 0x59a   : > { %1977 = vmatpush.bf16.msra.mxu1 %v1972_v59 }
 0x59e   : > { %1978 = vmatpush.bf16.msra.mxu1 %v1971_v42 }
 0x5a2   : > { %1979 = vmatpush.bf16.msra.mxu1 %v1970_v26 }
 0x5a6   : > { %1980 = vmatpush.bf16.msra.mxu1 %v1969_v30 }
 0x5aa   : > { %1981 = vmatpush.bf16.msra.mxu1 %v1968_v45 }
 0x5ae   : > { %1982 = vmatpush.bf16.msra.mxu1 %v1967_v60 }
 0x5b1   : > { %1983 = vmatmul.bf16.vlgmr.msra.gmra.mxu1 %v4536_v53  ;;  %v4020_v53 = vld [vmem:[%s5318_s6 + $0xe8] sm:$0xff] }
 0x5b2   : > { %2273 = vmatpush.bf16.msrb.mxu3 %v4020_v53  ;;  %v2236_v53 = vpop.f32.mrf.mxu2 }
 0x5c1   : > { %1988 = vmatmul.bf16.gmra.mxu1 %v4539_v29  ;;  %v4019_v29 = vld [vmem:[%s5318_s6 + $0xe0] sm:$0xff] }
 0x5c2   : > { %2274 = vmatpush.bf16.msrb.mxu3 %v4019_v29  ;;  %v4856_v29 = vld [vmem:[%s5319_s7 + $0x1] ss:$0 sm:$0xff] }
 0x5d1   : > { %1993 = vmatmul.bf16.gmra.mxu1 %v4542_v28  ;;  %v4018_v28 = vld [vmem:[%s5318_s6 + $0xd8] sm:$0xff] }
 0x5d2   : > { %2275 = vmatpush.bf16.msrb.mxu3 %v4018_v28  ;;  %v4858_v28 = vpop.f32.mrf.mxu2 }
 0x5e1   : > { %1998 = vmatmul.bf16.gmra.mxu1 %v4545_v27  ;;  %v4017_v27 = vld [vmem:[%s5318_s6 + $0xd0] sm:$0xff] }
 0x5e2   : > { %2276 = vmatpush.bf16.msrb.mxu3 %v4017_v27  ;;  %v2232_v27 = vadd.f32 %v4856_v29, %v2231_v37 }
 0x5f1   : > { %2003 = vmatmul.bf16.gmra.mxu1 %v4548_v47  ;;  %v4016_v47 = vld [vmem:[%s5318_s6 + $0xc8] sm:$0xff] }
 0x5f2   : > { %2277 = vmatpush.bf16.msrb.mxu3 %v4016_v47 }
 0x601   : > { %2008 = vmatmul.bf16.gmra.mxu1 %v4557_v13  ;;  %v4015_v13 = vld [vmem:[%s5318_s6 + $0xc0] sm:$0xff] }
 0x602   : > { %2278 = vmatpush.bf16.msrb.mxu3 %v4015_v13 }
 0x611   : > { %2013 = vmatmul.bf16.gmra.mxu1 %v4584_v7 }
 0x621   : > { %2018 = vmatmul.bf16.gmra.mxu1 %v4603_v62 }
 0x62e   : > { %v1984_v10 = vpop.f32.mrf.mxu1 }
 0x62f   : > { %v2024_v2 = vpack.c.bf16 %v1984_v10, %v1984_v10  ;;  %v2241_v10 = vpop.f32.mrf.mxu2 }
 0x631   : > { %v2056_v52 = vunpack.c.l.b16 %v2024_v2 }
 0x636   : > { %v1986_v18 = vpop.f32.mrf.mxu1 }
 0x637   : > { %v2025_v35 = vpack.c.bf16 %v1986_v18, %v1986_v18  ;;  %v2237_v18 = vadd.f32 %v4856_v29, %v2236_v53 }
 0x639   : > { %v2057_v41 = vunpack.c.l.b16 %v2025_v35  ;;  %v4866_v35 = vpop.f32.mrf.mxu2 }
 0x63b   : > { %v2072_v7 = vpack.c.b16 %v2057_v41, %v2056_v52 }
 0x63d   : > { %2279 = vmatmul.bf16.vlgmr.msrb.gmra.mxu3 %v2072_v7 }
 0x63e   : > { %v1989_v58 = vpop.f32.mrf.mxu1 }
 0x63f   : > { %v2026_v51 = vpack.c.bf16 %v1989_v58, %v1989_v58 }
 0x641   : > { %v2058_v15 = vunpack.c.l.b16 %v2026_v51  ;;  %v2246_v58 = vpop.f32.mrf.mxu2  ;;  %v2242_v51 = vadd.f32 %v4856_v29, %v2241_v10 }
 0x646   : > { %v1991_v55 = vpop.f32.mrf.mxu1 }
 0x647   : > { %v2027_v16 = vpack.c.bf16 %v1991_v55, %v1991_v55 }
 0x649   : > { %v2059_v17 = vunpack.c.l.b16 %v2027_v16 }
 0x64b   : > { %v2073_v20 = vpack.c.b16 %v2059_v17, %v2058_v15  ;;  %v2248_v15 = vpop.f32.mrf.mxu2 }
 0x64c   : > { %v2249_v53 = vadd.f32 %v4856_v29, %v2248_v15 }
 0x64d   : > { %2284 = vmatmul.bf16.gmra.mxu3 %v2073_v20 }
 0x64e   : > { %v1994_v5 = vpop.f32.mrf.mxu1 }
 0x64f   : > { %v2028_v43 = vpack.c.bf16 %v1994_v5, %v1994_v5  ;;  %v2247_v5 = vadd.f32 %v4856_v29, %v2246_v58 }
 0x651   : > { %v2060_v0 = vunpack.c.l.b16 %v2028_v43 }
 0x653   : > { %v2251_v20 = vpop.f32.mrf.mxu2 }
 0x656   : > { %v1996_v12 = vpop.f32.mrf.mxu1 }
 0x657   : > { %v2029_v62 = vpack.c.bf16 %v1996_v12, %v1996_v12 }
 0x659   : > { %v2061_v22 = vunpack.c.l.b16 %v2029_v62 }
 0x65b   : > { %v2074_v39 = vpack.c.b16 %v2061_v22, %v2060_v0  ;;  %v2253_v62 = vpop.f32.mrf.mxu2  ;;  %v2252_v22 = vadd.f32 %v4856_v29, %v2251_v20 }
 0x65d   : > { %2289 = vmatmul.bf16.gmra.mxu3 %v2074_v39 }
 0x65e   : > { %v1999_v25 = vpop.f32.mrf.mxu1 }
 0x65f   : > { %v2030_v44 = vpack.c.bf16 %v1999_v25, %v1999_v25 }
 0x661   : > { %v2062_v11 = vunpack.c.l.b16 %v2030_v44 }
 0x663   : > { %v2256_v44 = vpop.f32.mrf.mxu2 }
 0x666   : > { %v2001_v9 = vpop.f32.mrf.mxu1 }
 0x667   : > { %v2031_v23 = vpack.c.bf16 %v2001_v9, %v2001_v9 }
 0x669   : > { %v2063_v32 = vunpack.c.l.b16 %v2031_v23 }
 0x66b   : > { %v2075_v8 = vpack.c.b16 %v2063_v32, %v2062_v11  ;;  %v2258_v23 = vpop.f32.mrf.mxu2 }
 0x66d   : > { %2294 = vmatmul.bf16.gmra.mxu3 %v2075_v8 }
 0x66e   : > { %v2004_v50 = vpop.f32.mrf.mxu1 }
 0x66f   : > { %v2032_v31 = vpack.c.bf16 %v2004_v50, %v2004_v50 }
 0x671   : > { %v2064_v14 = vunpack.c.l.b16 %v2032_v31 }
 0x673   : > { %v2261_v32 = vpop.f32.mrf.mxu2 }
 0x676   : > { %v2006_v4 = vpop.f32.mrf.mxu1 }
 0x677   : > { %v2033_v56 = vpack.c.bf16 %v2006_v4, %v2006_v4 }
 0x679   : > { %v2065_v34 = vunpack.c.l.b16 %v2033_v56 }
 0x67b   : > { %v2076_v21 = vpack.c.b16 %v2065_v34, %v2064_v14  ;;  %v2263_v50 = vpop.f32.mrf.mxu2 }
 0x67d   : > { %2299 = vmatmul.bf16.gmra.mxu3 %v2076_v21  ;;  %v2264_v21 = vadd.f32 %v4856_v29, %v2263_v50 }
 0x67e   : > { %v2009_v48 = vpop.f32.mrf.mxu1 }
 0x67f   : > { %v2034_v59 = vpack.c.bf16 %v2009_v48, %v2009_v48 }
 0x681   : > { %v2066_v40 = vunpack.c.l.b16 %v2034_v59 }
 0x683   : > { %v2266_v56 = vpop.f32.mrf.mxu2 }
 0x684   : > { %v2267_v34 = vadd.f32 %v4856_v29, %v2266_v56 }
 0x686   : > { %v2011_v33 = vpop.f32.mrf.mxu1 }
 0x687   : > { %v2035_v3 = vpack.c.bf16 %v2011_v33, %v2011_v33  ;;  %v2262_v33 = vadd.f32 %v4856_v29, %v2261_v32 }
 0x689   : > { %v2067_v49 = vunpack.c.l.b16 %v2035_v3 }
 0x68b   : > { %v2077_v42 = vpack.c.b16 %v2067_v49, %v2066_v40  ;;  %v2268_v59 = vpop.f32.mrf.mxu2  ;;  %v2259_v40 = vadd.f32 %v4856_v29, %v2258_v23 }
 0x68c   : > { %v2269_v49 = vadd.f32 %v4856_v29, %v2268_v59 }
 0x68d   : > { %2304 = vmatmul.bf16.gmra.mxu3 %v2077_v42 }
 0x68e   : > { %v2014_v24 = vpop.f32.mrf.mxu1 }
 0x68f   : > { %v2036_v46 = vpack.c.bf16 %v2014_v24, %v2014_v24 }
 0x691   : > { %v2068_v26 = vunpack.c.l.b16 %v2036_v46 }
 0x696   : > { %v2016_v54 = vpop.f32.mrf.mxu1 }
 0x697   : > { %v2037_v19 = vpack.c.bf16 %v2016_v54, %v2016_v54  ;;  %v2257_v54 = vadd.f32 %v4856_v29, %v2256_v44 }
 0x699   : > { %v2069_v6 = vunpack.c.l.b16 %v2037_v19 }
 0x69b   : > { %v2078_v63 = vpack.c.b16 %v2069_v6, %v2068_v26 }
 0x69d   : > { %2309 = vmatmul.bf16.gmra.mxu3 %v2078_v63  ;;  %v2254_v63 = vadd.f32 %v4856_v29, %v2253_v62 }
 0x69e   : > { %v2019_v30 = vpop.f32.mrf.mxu1 }
 0x69f   : > { %v2038_v38 = vpack.c.bf16 %v2019_v30, %v2019_v30 }
 0x6a1   : > { %v2070_v60 = vunpack.c.l.b16 %v2038_v38 }
 0x6a6   : > { %v2021_v36 = vpop.f32.mrf.mxu1 }
 0x6a7   : > { %v2039_v45 = vpack.c.bf16 %v2021_v36, %v2021_v36 }
 0x6a9   : > { %v2071_v1 = vunpack.c.l.b16 %v2039_v45 }
 0x6ab   : > { %v2079_v61 = vpack.c.b16 %v2071_v1, %v2070_v60 }
 0x6ad   : > { %2314 = vmatmul.bf16.gmra.mxu3 %v2079_v61 }
 0x6c0   : > { %v2280_v47 = vpop.f32.mrf.mxu3 }
 0x6c1   : > { %v4861_v13 = vadd.f32 %v2280_v47, %v2232_v27 }
 0x6c8   : > { %v4863_v2 = vpop.f32.mrf.mxu3 }
 0x6d0   : > { %v2285_v52 = vpop.f32.mrf.mxu3 }
 0x6d1   : > { %v4868_v41 = vadd.f32 %v2285_v52, %v2237_v18 }
 0x6d3   : > { %v2322_v59 = vmax.f32 %v4868_v41, 0.0 }
 0x6d8   : > { %v4870_v7 = vpop.f32.mrf.mxu3 }
 0x6e0   : > { %v2290_v55 = vpop.f32.mrf.mxu3 }
 0x6e1   : > { %v4873_v16 = vadd.f32 %v2290_v55, %v2242_v51 }
 0x6e3   : > { %v2324_v56 = vmax.f32 %v4873_v16, 0.0 }
 0x6e8   : > { %v2292_v17 = vpop.f32.mrf.mxu3 }
 0x6f0   : > { %v2295_v43 = vpop.f32.mrf.mxu3 }
 0x6f1   : > { %v4876_v12 = vadd.f32 %v2295_v43, %v2247_v5  ;;  %v2244_v5 = vadd.f32 %v4856_v29, %v4866_v35 }
 0x6f8   : > { %v2297_v0 = vpop.f32.mrf.mxu3 }
 0x6f9   : > { %v2298_v52 = vadd.f32 %v2297_v0, %v2249_v53  ;;  %v2239_v0 = vadd.f32 %v4856_v29, %v4858_v28  ;;  %v4045_v53 = vld [vmem:[%s5318_s6 + $0x130] sm:$0xff] }
 0x6fb   : > { %v2327_v15 = vmax.f32 %v2298_v52, 0.0  ;;  %v2288_v35 = vadd.f32 %v4870_v7, %v2239_v0  ;;  %v4043_v52 = vld [vmem:[%s5318_s6 + $0x120] sm:$0xff] }
 0x6fc   : > { %v4031_v0 = vld [vmem:[%s5316_s4 + $0x140] sm:$0xff] }
 0x6fd   : > { %v2343_v50 = vpack.c.bf16 %v2327_v15, %v2327_v15  ;;  %v4032_v15 = vld [vmem:[%s5316_s4 + $0x148] sm:$0xff] }
 0x700   : > { %v2300_v39 = vpop.f32.mrf.mxu3 }
 0x701   : > { %v2301_v25 = vadd.f32 %v2300_v39, %v2252_v22  ;;  %v2293_v39 = vadd.f32 %v2292_v17, %v2244_v5  ;;  %v4159_v5 = vld [vmem:[#allocation2 + $0x20] sm:$0xff] }
 0x703   : > { %v2328_v43 = vmax.f32 %v2301_v25, 0.0  ;;  %v2325_v25 = vmax.f32 %v2293_v39, 0.0  ;;  %v4027_v39 = vld [vmem:[%s5316_s4 + $0x120] sm:$0xff] }
 0x705   : > { %v2344_v32 = vpack.c.bf16 %v2328_v43, %v2328_v43  ;;  %v4028_v43 = vld [vmem:[%s5316_s4 + $0x128] sm:$0xff] }
 0x707   : > { %v2376_v28 = vunpack.c.l.b16 %v2344_v32  ;;  %v4025_v32 = vld [vmem:[%s5316_s4 + $0x110] sm:$0xff] }
 0x708   : > { %v2302_v9 = vpop.f32.mrf.mxu3 }
 0x709   : > { %v2303_v45 = vadd.f32 %v2302_v9, %v2254_v63 }
 0x70b   : > { %v2329_v58 = vmax.f32 %v2303_v45, 0.0  ;;  %v4038_v45 = vld [vmem:[%s5316_s4 + $0x178] sm:$0xff] }
 0x70c   : > { %2696 = vmatpush.bf16.msra.mxu2 %v4038_v45 }
 0x70d   : > { %v2345_v44 = vpack.c.bf16 %v2329_v58, %v2329_v58  ;;  %v4029_v58 = vld [vmem:[%s5316_s4 + $0x130] sm:$0xff] }
 0x710   : > { %v2305_v11 = vpop.f32.mrf.mxu3 }
 0x711   : > { %v2306_v37 = vadd.f32 %v2305_v11, %v2257_v54  ;;  %v2326_v11 = vmax.f32 %v4876_v12, 0.0 }
 0x713   : > { %v2330_v27 = vmax.f32 %v2306_v37, 0.0 }
 0x715   : > { %v2346_v62 = vpack.c.bf16 %v2330_v27, %v2330_v27  ;;  %v4030_v27 = vld [vmem:[%s5316_s4 + $0x138] sm:$0xff] }
 0x716   : > { %2647 = vmatpush.bf16.msrb.mxu1 %v4030_v27 }
 0x718   : > { %v2307_v8 = vpop.f32.mrf.mxu3 }
 0x719   : > { %v2308_v19 = vadd.f32 %v2307_v8, %v2259_v40  ;;  %v2378_v8 = vunpack.c.l.b16 %v2346_v62  ;;  %v4033_v62 = vld [vmem:[%s5316_s4 + $0x150] sm:$0xff] }
 0x71a   : > { %2648 = vmatpush.bf16.msrb.mxu1 %v4029_v58 }
 0x71b   : > { %v2331_v60 = vmax.f32 %v2308_v19, 0.0 }
 0x71d   : > { %v2347_v51 = vpack.c.bf16 %v2331_v60, %v2331_v60  ;;  %v4046_v60 = vld [vmem:[%s5318_s6 + $0x138] sm:$0xff] }
 0x71e   : > { %2649 = vmatpush.bf16.msrb.mxu1 %v4028_v43 }
 0x71f   : > { %v2379_v9 = vunpack.c.l.b16 %v2347_v51  ;;  %v4034_v51 = vld [vmem:[%s5316_s4 + $0x158] sm:$0xff] }
 0x720   : > { %v2310_v31 = vpop.f32.mrf.mxu3 }
 0x721   : > { %v2311_v42 = vadd.f32 %v2310_v31, %v2262_v33  ;;  %v2377_v31 = vunpack.c.l.b16 %v2345_v44  ;;  %v4899_v17 = vpack.c.b16 %v2379_v9, %v2378_v8  ;;  %v2340_v33 = vpack.c.bf16 %v2324_v56, %v2324_v56  ;;  %v4040_v44 = vld [vmem:[%s5318_s6 + $0x108] sm:$0xff]  ;;  %v4026_v9 = vld [vmem:[%s5316_s4 + $0x118] sm:$0xff] }
 0x722   : > { %2650 = vmatpush.bf16.msrb.mxu1 %v4027_v39  ;;  %v4160_v8 = vld [vmem:[#allocation2 + $0x28] sm:$0xff] }
 0x723   : > { %v2332_v30 = vmax.f32 %v2311_v42, 0.0  ;;  %v4906_v7 = vpack.c.b16 %v2377_v31, %v2376_v28  ;;  %v2338_v42 = vpack.c.bf16 %v2322_v59, %v2322_v59  ;;  %v4162_v31 = vld [vmem:[#allocation2 + $0x38] sm:$0xff] }
 0x725   : > { %v2348_v47 = vpack.c.bf16 %v2332_v30, %v2332_v30  ;;  %v2370_v19 = vunpack.c.l.b16 %v2338_v42  ;;  %v4155_v30 = vld [vmem:[#allocation2] sm:$0xff] }
 0x726   : > { %2651 = vmatpush.bf16.msrb.mxu1 %v4026_v9 }
 0x727   : > { %v2380_v22 = vunpack.c.l.b16 %v2348_v47  ;;  %v4036_v47 = vld [vmem:[%s5316_s4 + $0x168] sm:$0xff] }
 0x728   : > { %v2312_v4 = vpop.f32.mrf.mxu3 }
 0x729   : > { %v2313_v3 = vadd.f32 %v2312_v4, %v2264_v21  ;;  %v2234_v4 = vadd.f32 %v4856_v29, %v4851_v57  ;;  %v2341_v21 = vpack.c.bf16 %v2325_v25, %v2325_v25  ;;  %v4024_v25 = vld [vmem:[%s5316_s4 + $0x108] sm:$0xff] }
 0x72a   : > { %2652 = vmatpush.bf16.msrb.mxu1 %v4025_v32 }
 0x72b   : > { %v2333_v26 = vmax.f32 %v2313_v3, 0.0  ;;  %v2283_v12 = vadd.f32 %v4863_v2, %v2234_v4  ;;  %v2373_v16 = vunpack.c.l.b16 %v2341_v21  ;;  %v2372_v2 = vunpack.c.l.b16 %v2340_v33  ;;  %v4163_v4 = vld [vmem:[%s4254_s14 + $0x8] sm:$0xff] }
 0x72d   : > { %v2349_v1 = vpack.c.bf16 %v2333_v26, %v2333_v26  ;;  %v2321_v57 = vmax.f32 %v2283_v12, 0.0  ;;  %v4914_v54 = vpack.c.b16 %v2373_v16, %v2372_v2 }
 0x72e   : > { %2653 = vmatpush.bf16.msrb.mxu1 %v4024_v25 }
 0x72f   : > { %v2381_v55 = vunpack.c.l.b16 %v2349_v1  ;;  %v4158_v1 = vld [vmem:[#allocation2 + $0x8] sm:$0xff] }
 0x730   : > { %v2315_v14 = vpop.f32.mrf.mxu3 }
 0x731   : > { %v2316_v48 = vadd.f32 %v2315_v14, %v2267_v34  ;;  %v4892_v23 = vpack.c.b16 %v2381_v55, %v2380_v22  ;;  %v2342_v14 = vpack.c.bf16 %v2326_v11, %v2326_v11  ;;  %v2323_v34 = vmax.f32 %v2288_v35, 0.0  ;;  %v4042_v55 = vld [vmem:[%s5318_s6 + $0x118] sm:$0xff]  ;;  %v4041_v22 = vld [vmem:[%s5318_s6 + $0x110] sm:$0xff]  ;;  %v4039_v11 = vld [vmem:[%s5318_s6 + $0x100] sm:$0xff] }
 0x732   : > { %v4161_v35 = vld [vmem:[%s4254_s14] sm:$0xff] }
 0x733   : > { %v2334_v24 = vmax.f32 %v2316_v48, 0.0  ;;  %v2375_v48 = vunpack.c.l.b16 %v2343_v50  ;;  %v2374_v3 = vunpack.c.l.b16 %v2342_v14  ;;  %v2339_v29 = vpack.c.bf16 %v2323_v34, %v2323_v34  ;;  %v4023_v50 = vld [vmem:[%s5316_s4 + $0x100] sm:$0xff]  ;;  %v4164_v14 = vld [vmem:[%s4254_s14 + $0x10] sm:$0xff] }
 0x734   : > { %2654 = vmatpush.bf16.msrb.mxu1 %v4023_v50 }
 0x735   : > { %v2350_v38 = vpack.c.bf16 %v2334_v24, %v2334_v24  ;;  %v4910_v40 = vpack.c.b16 %v2375_v48, %v2374_v3  ;;  %v2337_v24 = vpack.c.bf16 %v2321_v57, %v2321_v57  ;;  %v4165_v3 = vld [vmem:[%s4254_s14 + $0x18] sm:$0xff] }
 0x737   : > { %v2382_v10 = vunpack.c.l.b16 %v2350_v38  ;;  %v2369_v26 = vunpack.c.l.b16 %v2337_v24  ;;  %v4156_v38 = vld [vmem:[#allocation2 + $0x18] sm:$0xff] }
 0x738   : > { %v2317_v46 = vpop.f32.mrf.mxu3 }
 0x739   : > { %v2318_v6 = vadd.f32 %v2317_v46, %v2269_v49  ;;  %v2320_v49 = vmax.f32 %v4861_v13, 0.0  ;;  %v2371_v46 = vunpack.c.l.b16 %v2339_v29  ;;  %v4154_v13 = vld [vmem:[#allocation2 + $0x30] sm:$0xff] }
 0x73b   : > { %v2335_v36 = vmax.f32 %v2318_v6, 0.0  ;;  %v2336_v41 = vpack.c.bf16 %v2320_v49, %v2320_v49  ;;  %v4917_v6 = vpack.c.b16 %v2371_v46, %v2370_v19  ;;  %v4166_v46 = vld [vmem:[%s4254_s14 + $0x20] sm:$0xff] }
 0x73d   : > { %v2351_v61 = vpack.c.bf16 %v2335_v36, %v2335_v36  ;;  %v2368_v63 = vunpack.c.l.b16 %v2336_v41  ;;  %v4157_v36 = vld [vmem:[#allocation2 + $0x10] sm:$0xff] }
 0x73f   : > { %v2383_v18 = vunpack.c.l.b16 %v2351_v61  ;;  %v4920_v37 = vpack.c.b16 %v2369_v26, %v2368_v63  ;;  %v4037_v61 = vld [vmem:[%s5316_s4 + $0x170] sm:$0xff] }
 0x740   : > { %2697 = vmatpush.bf16.msra.mxu2 %v4037_v61 }
 0x741   : > { %v4887_v20 = vpack.c.b16 %v2383_v18, %v2382_v10  ;;  %v4044_v10 = vld [vmem:[%s5318_s6 + $0x128] sm:$0xff]  ;;  %v4035_v18 = vld [vmem:[%s5316_s4 + $0x160] sm:$0xff] }
 0x743   : > { %2400 = vmatpush.bf16.msrb.mxu0 %v4887_v20 }
 0x744   : > { %2698 = vmatpush.bf16.msra.mxu2 %v4036_v47 }
 0x747   : > { %2401 = vmatpush.bf16.msrb.mxu0 %v4892_v23 }
 0x748   : > { %2699 = vmatpush.bf16.msra.mxu2 %v4035_v18 }
 0x74b   : > { %2402 = vmatpush.bf16.msrb.mxu0 %v4899_v17 }
 0x74c   : > { %2700 = vmatpush.bf16.msra.mxu2 %v4034_v51  ;;  %v4169_v51 = vld [vmem:[%s4254_s14 + $0x38] sm:$0xff] }
 0x74f   : > { %2403 = vmatpush.bf16.msrb.mxu0 %v4906_v7 }
 0x750   : > { %2701 = vmatpush.bf16.msra.mxu2 %v4033_v62 }
 0x753   : > { %2404 = vmatpush.bf16.msrb.mxu0 %v4910_v40 }
 0x754   : > { %2702 = vmatpush.bf16.msra.mxu2 %v4032_v15 }
 0x757   : > { %2405 = vmatpush.bf16.msrb.mxu0 %v4914_v54 }
 0x758   : > { %2703 = vmatpush.bf16.msra.mxu2 %v4031_v0 }
 0x75b   : > { %2406 = vmatpush.bf16.msrb.mxu0 %v4917_v6  ;;  %2704 = vmatmul.bf16.vlgmr.msra.gmra.mxu2 %v4161_v35 }
 0x75f   : > { %2407 = vmatpush.bf16.msrb.mxu0 %v4920_v37 }
 0x762   : > { %2408 = vmatmul.bf16.vlgmr.msrb.gmra.mxu0 %v4154_v13 }
 0x763   : > { %3016 = vmatpush.bf16.msra.mxu0 %v4046_v60 }
 0x767   : > { %3017 = vmatpush.bf16.msra.mxu0 %v4045_v53  ;;  %v4168_v53 = vld [vmem:[%s4254_s14 + $0x30] sm:$0xff] }
 0x76b   : > { %3018 = vmatpush.bf16.msra.mxu0 %v4044_v10  ;;  %2709 = vmatmul.bf16.gmra.mxu2 %v4163_v4 }
 0x76f   : > { %3019 = vmatpush.bf16.msra.mxu0 %v4043_v52 }
 0x772   : > { %2413 = vmatmul.bf16.gmra.mxu0 %v4155_v30  ;;  %v4167_v30 = vld [vmem:[%s4254_s14 + $0x28] sm:$0xff] }
 0x773   : > { %3020 = vmatpush.bf16.msra.mxu0 %v4042_v55 }
 0x777   : > { %3021 = vmatpush.bf16.msra.mxu0 %v4041_v22 }
 0x77b   : > { %3022 = vmatpush.bf16.msra.mxu0 %v4040_v44  ;;  %2714 = vmatmul.bf16.gmra.mxu2 %v4164_v14 }
 0x77f   : > { %3023 = vmatpush.bf16.msra.mxu0 %v4039_v11 }
 0x782   : > { %2418 = vmatmul.bf16.gmra.mxu0 %v4156_v38 }
 0x78b   : > { %2719 = vmatmul.bf16.gmra.mxu2 %v4165_v3 }
 0x792   : > { %2423 = vmatmul.bf16.gmra.mxu0 %v4157_v36 }
 0x79b   : > { %2724 = vmatmul.bf16.gmra.mxu2 %v4166_v46 }
 0x7a2   : > { %2428 = vmatmul.bf16.gmra.mxu0 %v4158_v1 }
 0x7ab   : > { %2729 = vmatmul.bf16.gmra.mxu2 %v4167_v30 }
 0x7b2   : > { %2433 = vmatmul.bf16.gmra.mxu0 %v4159_v5 }
 0x7bb   : > { %2734 = vmatmul.bf16.gmra.mxu2 %v4168_v53 }
 0x7c2   : > { %2438 = vmatmul.bf16.gmra.mxu0 %v4160_v8 }
 0x7cb   : > { %2739 = vmatmul.bf16.gmra.mxu2 %v4169_v51 }
 0x7d2   : > { %2443 = vmatmul.bf16.gmra.mxu0 %v4162_v31 }
 0x7de   : > { %v2705_v8 = vpop.f32.mrf.mxu2 }
 0x7df   : > { %v2409_v56 = vpop.f32.mrf.mxu0 }
 0x7e0   : > { %v2449_v28 = vpack.c.bf16 %v2409_v56, %v2409_v56 }
 0x7e2   : > { %3024 = vmatmul.bf16.vlgmr.msra.gmra.mxu0 %v4920_v37  ;;  %v2481_v21 = vunpack.c.l.b16 %v2449_v28  ;;  %v5014_v28 = vld [vmem:[%s5317_s5 + $0x2] ss:$0 sm:$0xff] }
 0x7e6   : > { %v2707_v31 = vpop.f32.mrf.mxu2 }
 0x7e7   : > { %v2411_v12 = vpop.f32.mrf.mxu0 }
 0x7e8   : > { %v2450_v34 = vpack.c.bf16 %v2411_v12, %v2411_v12 }
 0x7ea   : > { %v2482_v48 = vunpack.c.l.b16 %v2450_v34 }
 0x7ec   : > { %v2497_v59 = vpack.c.b16 %v2482_v48, %v2481_v21 }
 0x7ee   : > { %2655 = vmatmul.bf16.vlgmr.msrb.gmra.mxu1 %v2497_v59 }
 0x7ef   : > { %v2414_v33 = vpop.f32.mrf.mxu0 }
 0x7f0   : > { %v2451_v57 = vpack.c.bf16 %v2414_v33, %v2414_v33 }
 0x7f2   : > { %3029 = vmatmul.bf16.gmra.mxu0 %v4917_v6  ;;  %v2483_v49 = vunpack.c.l.b16 %v2451_v57 }
 0x7f7   : > { %v2416_v29 = vpop.f32.mrf.mxu0 }
 0x7f8   : > { %v2452_v16 = vpack.c.bf16 %v2416_v29, %v2416_v29 }
 0x7fa   : > { %v2484_v42 = vunpack.c.l.b16 %v2452_v16 }
 0x7fc   : > { %v2498_v2 = vpack.c.b16 %v2484_v42, %v2483_v49 }
 0x7fe   : > { %2660 = vmatmul.bf16.gmra.mxu1 %v2498_v2 }
 0x7ff   : > { %v2419_v24 = vpop.f32.mrf.mxu0 }
 0x800   : > { %v2453_v41 = vpack.c.bf16 %v2419_v24, %v2419_v24 }
 0x802   : > { %3034 = vmatmul.bf16.gmra.mxu0 %v4914_v54  ;;  %v2485_v63 = vunpack.c.l.b16 %v2453_v41 }
 0x807   : > { %v2421_v19 = vpop.f32.mrf.mxu0 }
 0x808   : > { %v2454_v26 = vpack.c.bf16 %v2421_v19, %v2421_v19 }
 0x80a   : > { %v2486_v6 = vunpack.c.l.b16 %v2454_v26 }
 0x80c   : > { %v2499_v37 = vpack.c.b16 %v2486_v6, %v2485_v63 }
 0x80e   : > { %2665 = vmatmul.bf16.gmra.mxu1 %v2499_v37 }
 0x80f   : > { %v2424_v13 = vpop.f32.mrf.mxu0 }
 0x810   : > { %v2455_v38 = vpack.c.bf16 %v2424_v13, %v2424_v13 }
 0x812   : > { %3039 = vmatmul.bf16.gmra.mxu0 %v4910_v40  ;;  %v2487_v60 = vunpack.c.l.b16 %v2455_v38 }
 0x817   : > { %v2426_v36 = vpop.f32.mrf.mxu0 }
 0x818   : > { %v2456_v45 = vpack.c.bf16 %v2426_v36, %v2426_v36 }
 0x81a   : > { %v2488_v54 = vunpack.c.l.b16 %v2456_v45 }
 0x81c   : > { %v2500_v1 = vpack.c.b16 %v2488_v54, %v2487_v60 }
 0x81e   : > { %2670 = vmatmul.bf16.gmra.mxu1 %v2500_v1 }
 0x81f   : > { %v2429_v61 = vpop.f32.mrf.mxu0 }
 0x820   : > { %v2457_v27 = vpack.c.bf16 %v2429_v61, %v2429_v61 }
 0x822   : > { %3044 = vmatmul.bf16.gmra.mxu0 %v4906_v7  ;;  %v2489_v18 = vunpack.c.l.b16 %v2457_v27 }
 0x827   : > { %v2431_v47 = vpop.f32.mrf.mxu0 }
 0x828   : > { %v2458_v10 = vpack.c.bf16 %v2431_v47, %v2431_v47 }
 0x82a   : > { %v2490_v40 = vunpack.c.l.b16 %v2458_v10 }
 0x82c   : > { %v2501_v52 = vpack.c.b16 %v2490_v40, %v2489_v18 }
 0x82e   : > { %2675 = vmatmul.bf16.gmra.mxu1 %v2501_v52 }
 0x82f   : > { %v2434_v58 = vpop.f32.mrf.mxu0 }
 0x830   : > { %v2459_v55 = vpack.c.bf16 %v2434_v58, %v2434_v58 }
 0x832   : > { %3049 = vmatmul.bf16.gmra.mxu0 %v4899_v17  ;;  %v2491_v62 = vunpack.c.l.b16 %v2459_v55 }
 0x837   : > { %v2436_v5 = vpop.f32.mrf.mxu0 }
 0x838   : > { %v2460_v43 = vpack.c.bf16 %v2436_v5, %v2436_v5 }
 0x83a   : > { %v2492_v22 = vunpack.c.l.b16 %v2460_v43 }
 0x83c   : > { %v2502_v7 = vpack.c.b16 %v2492_v22, %v2491_v62 }
 0x83e   : > { %2680 = vmatmul.bf16.gmra.mxu1 %v2502_v7 }
 0x83f   : > { %v2439_v39 = vpop.f32.mrf.mxu0 }
 0x840   : > { %v2461_v15 = vpack.c.bf16 %v2439_v39, %v2439_v39 }
 0x842   : > { %3054 = vmatmul.bf16.gmra.mxu0 %v4892_v23  ;;  %v2493_v0 = vunpack.c.l.b16 %v2461_v15  ;;  %v2710_v23 = vpop.f32.mrf.mxu2 }
 0x847   : > { %v2441_v44 = vpop.f32.mrf.mxu0 }
 0x848   : > { %v2462_v9 = vpack.c.bf16 %v2441_v44, %v2441_v44 }
 0x84a   : > { %v2494_v11 = vunpack.c.l.b16 %v2462_v9  ;;  %v2712_v21 = vpop.f32.mrf.mxu2 }
 0x84c   : > { %v2503_v32 = vpack.c.b16 %v2494_v11, %v2493_v0 }
 0x84e   : > { %2685 = vmatmul.bf16.gmra.mxu1 %v2503_v32 }
 0x84f   : > { %v2444_v17 = vpop.f32.mrf.mxu0 }
 0x850   : > { %v2463_v35 = vpack.c.bf16 %v2444_v17, %v2444_v17 }
 0x852   : > { %3059 = vmatmul.bf16.gmra.mxu0 %v4887_v20  ;;  %v2495_v4 = vunpack.c.l.b16 %v2463_v35  ;;  %v2715_v3 = vpop.f32.mrf.mxu2 }
 0x857   : > { %v2446_v25 = vpop.f32.mrf.mxu0 }
 0x858   : > { %v2464_v50 = vpack.c.bf16 %v2446_v25, %v2446_v25 }
 0x85a   : > { %v2496_v56 = vunpack.c.l.b16 %v2464_v50  ;;  %v2717_v24 = vpop.f32.mrf.mxu2 }
 0x85c   : > { %v2504_v14 = vpack.c.b16 %v2496_v56, %v2495_v4 }
 0x85e   : > { %2690 = vmatmul.bf16.gmra.mxu1 %v2504_v14 }
 0x862   : > { %v2720_v13 = vpop.f32.mrf.mxu2 }
 0x86a   : > { %v2722_v60 = vpop.f32.mrf.mxu2 }
 0x86b   : > { %v2656_v12 = vpop.f32.mrf.mxu1 }
 0x86c   : > { %v2657_v34 = vadd.f32 %v5014_v28, %v2656_v12 }
 0x86e   : > { %v2706_v48 = vadd.f32 %v2705_v8, %v2657_v34 }
 0x870   : > { %v2745_v57 = vmax.f32 %v2706_v48, 0.0 }
 0x872   : > { %v2725_v18 = vpop.f32.mrf.mxu2 }
 0x873   : > { %v2658_v20 = vpop.f32.mrf.mxu1 }
 0x874   : > { %v2659_v59 = vadd.f32 %v5014_v28, %v2658_v20 }
 0x876   : > { %v2708_v33 = vadd.f32 %v2707_v31, %v2659_v59 }
 0x878   : > { %v2746_v29 = vmax.f32 %v2708_v33, 0.0 }
 0x87a   : > { %v5018_v16 = vpack.c.bf16 %v2746_v29, %v2745_v57  ;;  %v2727_v5 = vpop.f32.mrf.mxu2 }
 0x87b   : > { %v2661_v49 = vpop.f32.mrf.mxu1 }
 0x87c   : > { %v2662_v42 = vadd.f32 %v5014_v28, %v2661_v49 }
 0x87e   : > { %v2711_v2 = vadd.f32 %v2710_v23, %v2662_v42 }
 0x880   : > { %v2747_v26 = vmax.f32 %v2711_v2, 0.0 }
 0x882   : > { %v2730_v15 = vpop.f32.mrf.mxu2 }
 0x883   : > { %v2663_v46 = vpop.f32.mrf.mxu1 }
 0x884   : > { %v2664_v41 = vadd.f32 %v5014_v28, %v2663_v46 }
 0x886   : > { %v2713_v19 = vadd.f32 %v2712_v21, %v2664_v41 }
 0x888   : > { %v2748_v63 = vmax.f32 %v2713_v19, 0.0 }
 0x88a   : > { %v5022_v6 = vpack.c.bf16 %v2748_v63, %v2747_v26  ;;  %v2732_v9 = vpop.f32.mrf.mxu2 }
 0x88b   : > { %v2666_v37 = vpop.f32.mrf.mxu1 }
 0x88c   : > { %v2667_v30 = vadd.f32 %v5014_v28, %v2666_v37 }
 0x88e   : > { %v2716_v38 = vadd.f32 %v2715_v3, %v2667_v30 }
 0x890   : > { %v2749_v1 = vmax.f32 %v2716_v38, 0.0  ;;  %v4171_v38 = vld [vmem:[#allocation3 + $0x18] sm:$0xff] }
 0x892   : > { %v2735_v11 = vpop.f32.mrf.mxu2 }
 0x893   : > { %v2668_v36 = vpop.f32.mrf.mxu1 }
 0x894   : > { %v2669_v45 = vadd.f32 %v5014_v28, %v2668_v36  ;;  %v4172_v36 = vld [vmem:[#allocation3 + $0x10] sm:$0xff] }
 0x896   : > { %v2718_v54 = vadd.f32 %v2717_v24, %v2669_v45  ;;  %v4173_v45 = vld [vmem:[#allocation3 + $0x20] sm:$0xff] }
 0x898   : > { %v2750_v61 = vmax.f32 %v2718_v54, 0.0  ;;  %v4175_v54 = vld [vmem:[#allocation3 + $0x8] sm:$0xff] }
 0x89a   : > { %v2763_v53 = vpack.c.bf16 %v2750_v61, %v2749_v1  ;;  %v2737_v17 = vpop.f32.mrf.mxu2  ;;  %v4054_v1 = vld [vmem:[%s5318_s6 + $0x178] sm:$0xff]  ;;  %v4051_v61 = vld [vmem:[%s5318_s6 + $0x160] sm:$0xff] }
 0x89b   : > { %v2671_v27 = vpop.f32.mrf.mxu1  ;;  %3065 = vmatpush.bf16.msra.mxu1 %v4054_v1 }
 0x89c   : > { %v2672_v47 = vadd.f32 %v5014_v28, %v2671_v27  ;;  %v4050_v27 = vld [vmem:[%s5318_s6 + $0x158] sm:$0xff] }
 0x89e   : > { %v2721_v10 = vadd.f32 %v2720_v13, %v2672_v47  ;;  %v4049_v47 = vld [vmem:[%s5318_s6 + $0x150] sm:$0xff] }
 0x8a0   : > { %v2751_v51 = vmax.f32 %v2721_v10, 0.0  ;;  %v4048_v10 = vld [vmem:[%s5318_s6 + $0x148] sm:$0xff] }
 0x8a2   : > { %v2740_v35 = vpop.f32.mrf.mxu2 }
 0x8a3   : > { %v2673_v40 = vpop.f32.mrf.mxu1 }
 0x8a4   : > { %v2674_v52 = vadd.f32 %v5014_v28, %v2673_v40  ;;  %v4177_v40 = vld [vmem:[#allocation3 + $0x38] sm:$0xff] }
 0x8a6   : > { %v2723_v58 = vadd.f32 %v2722_v60, %v2674_v52  ;;  %v4174_v60 = vld [vmem:[#allocation3 + $0x28] sm:$0xff] }
 0x8a8   : > { %v2752_v55 = vmax.f32 %v2723_v58, 0.0 }
 0x8aa   : > { %v2764_v43 = vpack.c.bf16 %v2752_v55, %v2751_v51  ;;  %v2742_v12 = vpop.f32.mrf.mxu2 }
 0x8ab   : > { %v2676_v62 = vpop.f32.mrf.mxu1 }
 0x8ac   : > { %v2677_v22 = vadd.f32 %v5014_v28, %v2676_v62 }
 0x8ae   : > { %v2726_v7 = vadd.f32 %v2725_v18, %v2677_v22  ;;  %v4047_v18 = vld [vmem:[%s5318_s6 + $0x140] sm:$0xff] }
 0x8b0   : > { %v2753_v13 = vmax.f32 %v2726_v7, 0.0 }
 0x8b3   : > { %v2678_v39 = vpop.f32.mrf.mxu1 }
 0x8b4   : > { %v2679_v57 = vadd.f32 %v5014_v28, %v2678_v39 }
 0x8b6   : > { %v2728_v46 = vadd.f32 %v2727_v5, %v2679_v57 }
 0x8b8   : > { %v2754_v63 = vmax.f32 %v2728_v46, 0.0 }
 0x8ba   : > { %v2765_v30 = vpack.c.bf16 %v2754_v63, %v2753_v13  ;;  %v3025_v13 = vpop.f32.mrf.mxu0 }
 0x8bb   : > { %v2681_v44 = vpop.f32.mrf.mxu1 }
 0x8bc   : > { %v2682_v20 = vadd.f32 %v5014_v28, %v2681_v44 }
 0x8be   : > { %v2731_v2 = vadd.f32 %v2730_v15, %v2682_v20 }
 0x8c0   : > { %v2755_v26 = vmax.f32 %v2731_v2, 0.0 }
 0x8c3   : > { %v2683_v0 = vpop.f32.mrf.mxu1 }
 0x8c4   : > { %v2684_v34 = vadd.f32 %v5014_v28, %v2683_v0 }
 0x8c6   : > { %v2733_v29 = vadd.f32 %v2732_v9, %v2684_v34 }
 0x8c8   : > { %v2756_v41 = vmax.f32 %v2733_v29, 0.0 }
 0x8ca   : > { %v2766_v37 = vpack.c.bf16 %v2756_v41, %v2755_v26 }
 0x8cb   : > { %v2686_v32 = vpop.f32.mrf.mxu1 }
 0x8cc   : > { %v2687_v56 = vadd.f32 %v5014_v28, %v2686_v32 }
 0x8ce   : > { %v2736_v59 = vadd.f32 %v2735_v11, %v2687_v56 }
 0x8d0   : > { %v2757_v24 = vmax.f32 %v2736_v59, 0.0 }
 0x8d3   : > { %v2688_v8 = vpop.f32.mrf.mxu1 }
 0x8d4   : > { %v2689_v31 = vadd.f32 %v5014_v28, %v2688_v8 }
 0x8d6   : > { %v2738_v21 = vadd.f32 %v2737_v17, %v2689_v31 }
 0x8d8   : > { %v2758_v49 = vmax.f32 %v2738_v21, 0.0 }
 0x8da   : > { %v2767_v19 = vpack.c.bf16 %v2758_v49, %v2757_v24 }
 0x8db   : > { %v2691_v25 = vpop.f32.mrf.mxu1 }
 0x8dc   : > { %v2692_v50 = vadd.f32 %v5014_v28, %v2691_v25 }
 0x8de   : > { %v2741_v14 = vadd.f32 %v2740_v35, %v2692_v50 }
 0x8e0   : > { %v2759_v33 = vmax.f32 %v2741_v14, 0.0 }
 0x8e3   : > { %v2693_v4 = vpop.f32.mrf.mxu1 }
 0x8e4   : > { %v2694_v23 = vadd.f32 %v5014_v28, %v2693_v4  ;;  %v4170_v28 = vld [vmem:[#allocation3] sm:$0xff] }
 0x8e6   : > { %v2743_v48 = vadd.f32 %v2742_v12, %v2694_v23 }
 0x8e8   : > { %v2760_v3 = vmax.f32 %v2743_v48, 0.0 }
 0x8ea   : > { %v2768_v42 = vpack.c.bf16 %v2760_v3, %v2759_v33 }
 0x8ec   : > { %2769 = vmatpush.bf16.msra.mxu3 %v2768_v42 }
 0x8f0   : > { %2770 = vmatpush.bf16.msra.mxu3 %v2767_v19 }
 0x8f4   : > { %2771 = vmatpush.bf16.msra.mxu3 %v2766_v37 }
 0x8f8   : > { %2772 = vmatpush.bf16.msra.mxu3 %v2765_v30 }
 0x8fc   : > { %2773 = vmatpush.bf16.msra.mxu3 %v2764_v43 }
 0x900   : > { %2774 = vmatpush.bf16.msra.mxu3 %v2763_v53  ;;  %v4176_v53 = vld [vmem:[#allocation3 + $0x30] sm:$0xff] }
 0x904   : > { %2775 = vmatpush.bf16.msra.mxu3 %v5022_v6  ;;  %v4052_v6 = vld [vmem:[%s5318_s6 + $0x168] sm:$0xff] }
 0x908   : > { %2776 = vmatpush.bf16.msra.mxu3 %v5018_v16  ;;  %v4053_v16 = vld [vmem:[%s5318_s6 + $0x170] sm:$0xff] }
 0x909   : > { %3066 = vmatpush.bf16.msra.mxu1 %v4053_v16 }
 0x90b   : > { %2777 = vmatmul.bf16.vlgmr.msra.gmra.mxu3 %v4170_v28 }
 0x90d   : > { %3067 = vmatpush.bf16.msra.mxu1 %v4052_v6 }
 0x911   : > { %3068 = vmatpush.bf16.msra.mxu1 %v4051_v61 }
 0x915   : > { %3069 = vmatpush.bf16.msra.mxu1 %v4050_v27  ;;  %v5065_v27 = vld [vmem:[%s5319_s7 + $0x2] ss:$0 sm:$0xff] }
 0x919   : > { %3070 = vmatpush.bf16.msra.mxu1 %v4049_v47 }
 0x91b   : > { %2782 = vmatmul.bf16.gmra.mxu3 %v4171_v38 }
 0x91d   : > { %3071 = vmatpush.bf16.msra.mxu1 %v4048_v10  ;;  %v3026_v10 = vadd.f32 %v5065_v27, %v3025_v13 }
 0x921   : > { %3072 = vmatpush.bf16.msra.mxu1 %v4047_v18 }
 0x92b   : > { %2787 = vmatmul.bf16.gmra.mxu3 %v4172_v36 }
 0x93b   : > { %2792 = vmatmul.bf16.gmra.mxu3 %v4173_v45  ;;  %v3027_v45 = vpop.f32.mrf.mxu0 }
 0x94b   : > { %2797 = vmatmul.bf16.gmra.mxu3 %v4174_v60 }
 0x95b   : > { %2802 = vmatmul.bf16.gmra.mxu3 %v4175_v54 }
 0x96b   : > { %2807 = vmatmul.bf16.gmra.mxu3 %v4176_v53  ;;  %v3030_v53 = vpop.f32.mrf.mxu0 }
 0x973   : > { %v3032_v47 = vpop.f32.mrf.mxu0 }
 0x97b   : > { %2812 = vmatmul.bf16.gmra.mxu3 %v4177_v40 }
 0x98e   : > { %v2778_v52 = vpop.f32.mrf.mxu3 }
 0x98f   : > { %v2818_v58 = vpack.c.bf16 %v2778_v52, %v2778_v52 }
 0x991   : > { %v2850_v5 = vunpack.c.l.b16 %v2818_v58  ;;  %v3035_v58 = vpop.f32.mrf.mxu0 }
 0x996   : > { %v2780_v51 = vpop.f32.mrf.mxu3 }
 0x997   : > { %v2819_v55 = vpack.c.bf16 %v2780_v51, %v2780_v51  ;;  %v3028_v51 = vadd.f32 %v5065_v27, %v3027_v45 }
 0x999   : > { %v2851_v43 = vunpack.c.l.b16 %v2819_v55 }
 0x99b   : > { %v2866_v62 = vpack.c.b16 %v2851_v43, %v2850_v5 }
 0x99d   : > { %3073 = vmatmul.bf16.vlgmr.msra.gmra.mxu1 %v2866_v62  ;;  %v3031_v62 = vadd.f32 %v5065_v27, %v3030_v53 }
 0x99e   : > { %v2783_v22 = vpop.f32.mrf.mxu3 }
 0x99f   : > { %v2820_v7 = vpack.c.bf16 %v2783_v22, %v2783_v22  ;;  %v3037_v22 = vpop.f32.mrf.mxu0 }
 0x9a1   : > { %v2852_v44 = vunpack.c.l.b16 %v2820_v7 }
 0x9a6   : > { %v2785_v39 = vpop.f32.mrf.mxu3 }
 0x9a7   : > { %v2821_v15 = vpack.c.bf16 %v2785_v39, %v2785_v39 }
 0x9a9   : > { %v2853_v9 = vunpack.c.l.b16 %v2821_v15 }
 0x9ab   : > { %v2867_v0 = vpack.c.b16 %v2853_v9, %v2852_v44  ;;  %v3033_v44 = vadd.f32 %v5065_v27, %v3032_v47 }
 0x9ad   : > { %3078 = vmatmul.bf16.gmra.mxu1 %v2867_v0 }
 0x9ae   : > { %v2788_v11 = vpop.f32.mrf.mxu3 }
 0x9af   : > { %v2822_v32 = vpack.c.bf16 %v2788_v11, %v2788_v11  ;;  %v3040_v11 = vpop.f32.mrf.mxu0 }
 0x9b1   : > { %v2854_v35 = vunpack.c.l.b16 %v2822_v32 }
 0x9b6   : > { %v2790_v17 = vpop.f32.mrf.mxu3 }
 0x9b7   : > { %v2823_v8 = vpack.c.bf16 %v2790_v17, %v2790_v17  ;;  %v3036_v17 = vadd.f32 %v5065_v27, %v3035_v58 }
 0x9b9   : > { %v2855_v25 = vunpack.c.l.b16 %v2823_v8 }
 0x9bb   : > { %v2868_v50 = vpack.c.b16 %v2855_v25, %v2854_v35 }
 0x9bd   : > { %3083 = vmatmul.bf16.gmra.mxu1 %v2868_v50  ;;  %v3042_v50 = vpop.f32.mrf.mxu0 }
 0x9be   : > { %v2793_v31 = vpop.f32.mrf.mxu3 }
 0x9bf   : > { %v2824_v4 = vpack.c.bf16 %v2793_v31, %v2793_v31  ;;  %v3038_v31 = vadd.f32 %v5065_v27, %v3037_v22 }
 0x9c1   : > { %v2856_v23 = vunpack.c.l.b16 %v2824_v4 }
 0x9c6   : > { %v2795_v56 = vpop.f32.mrf.mxu3 }
 0x9c7   : > { %v2825_v14 = vpack.c.bf16 %v2795_v56, %v2795_v56 }
 0x9c9   : > { %v2857_v12 = vunpack.c.l.b16 %v2825_v14 }
 0x9cb   : > { %v2869_v34 = vpack.c.b16 %v2857_v12, %v2856_v23  ;;  %v3045_v23 = vpop.f32.mrf.mxu0  ;;  %v3041_v12 = vadd.f32 %v5065_v27, %v3040_v11 }
 0x9cd   : > { %3088 = vmatmul.bf16.gmra.mxu1 %v2869_v34 }
 0x9ce   : > { %v2798_v21 = vpop.f32.mrf.mxu3 }
 0x9cf   : > { %v2826_v48 = vpack.c.bf16 %v2798_v21, %v2798_v21 }
 0x9d1   : > { %v2858_v33 = vunpack.c.l.b16 %v2826_v48 }
 0x9d6   : > { %v2800_v20 = vpop.f32.mrf.mxu3 }
 0x9d7   : > { %v2827_v59 = vpack.c.bf16 %v2800_v20, %v2800_v20  ;;  %v3043_v20 = vadd.f32 %v5065_v27, %v3042_v50 }
 0x9d9   : > { %v2859_v3 = vunpack.c.l.b16 %v2827_v59  ;;  %v3047_v59 = vpop.f32.mrf.mxu0 }
 0x9db   : > { %v2870_v57 = vpack.c.b16 %v2859_v3, %v2858_v33 }
 0x9dd   : > { %3093 = vmatmul.bf16.gmra.mxu1 %v2870_v57 }
 0x9de   : > { %v2803_v29 = vpop.f32.mrf.mxu3 }
 0x9df   : > { %v2828_v49 = vpack.c.bf16 %v2803_v29, %v2803_v29  ;;  %v3046_v29 = vadd.f32 %v5065_v27, %v3045_v23 }
 0x9e1   : > { %v2860_v24 = vunpack.c.l.b16 %v2828_v49 }
 0x9e6   : > { %v2805_v42 = vpop.f32.mrf.mxu3 }
 0x9e7   : > { %v2829_v2 = vpack.c.bf16 %v2805_v42, %v2805_v42 }
 0x9e9   : > { %v2861_v46 = vunpack.c.l.b16 %v2829_v2  ;;  %v3050_v2 = vpop.f32.mrf.mxu0 }
 0x9eb   : > { %v2871_v41 = vpack.c.b16 %v2861_v46, %v2860_v24  ;;  %v3048_v46 = vadd.f32 %v5065_v27, %v3047_v59 }
 0x9ed   : > { %3098 = vmatmul.bf16.gmra.mxu1 %v2871_v41 }
 0x9ee   : > { %v2808_v19 = vpop.f32.mrf.mxu3 }
 0x9ef   : > { %v2830_v26 = vpack.c.bf16 %v2808_v19, %v2808_v19 }
 0x9f1   : > { %v2862_v30 = vunpack.c.l.b16 %v2830_v26 }
 0x9f6   : > { %v2810_v63 = vpop.f32.mrf.mxu3 }
 0x9f7   : > { %v2831_v37 = vpack.c.bf16 %v2810_v63, %v2810_v63  ;;  %v3052_v63 = vpop.f32.mrf.mxu0 }
 0x9f9   : > { %v2863_v28 = vunpack.c.l.b16 %v2831_v37  ;;  %v3051_v37 = vadd.f32 %v5065_v27, %v3050_v2 }
 0x9fb   : > { %v2872_v38 = vpack.c.b16 %v2863_v28, %v2862_v30 }
 0x9fd   : > { %3103 = vmatmul.bf16.gmra.mxu1 %v2872_v38 }
 0x9fe   : > { %v2813_v36 = vpop.f32.mrf.mxu3 }
 0x9ff   : > { %v2832_v60 = vpack.c.bf16 %v2813_v36, %v2813_v36  ;;  %v3055_v38 = vpop.f32.mrf.mxu0  ;;  %v3053_v36 = vadd.f32 %v5065_v27, %v3052_v63 }
 0xa01   : > { %v2864_v16 = vunpack.c.l.b16 %v2832_v60 }
 0xa06   : > { %v2815_v54 = vpop.f32.mrf.mxu3 }
 0xa07   : > { %v2833_v1 = vpack.c.bf16 %v2815_v54, %v2815_v54 }
 0xa09   : > { %v2865_v6 = vunpack.c.l.b16 %v2833_v1  ;;  %v3056_v1 = vadd.f32 %v5065_v27, %v3055_v38 }
 0xa0b   : > { %v2873_v61 = vpack.c.b16 %v2865_v6, %v2864_v16  ;;  %v3057_v16 = vpop.f32.mrf.mxu0 }
 0xa0c   : > { %v3058_v47 = vadd.f32 %v5065_v27, %v3057_v16 }
 0xa0d   : > { %3108 = vmatmul.bf16.gmra.mxu1 %v2873_v61 }
 0xa13   : > { %v3060_v58 = vpop.f32.mrf.mxu0 }
 0xa1a   : > { %v3074_v18 = vpop.f32.mrf.mxu1 }
 0xa1b   : > { %v5068_v40 = vadd.f32 %v3074_v18, %v3026_v10 }
 0xa1d   : > { %v3114_v52 = vmax.f32 %v5068_v40, 0.0 }
 0xa22   : > { %v3076_v55 = vpop.f32.mrf.mxu1 }
 0xa23   : > { %v5072_v5 = vadd.f32 %v3076_v55, %v3028_v51  ;;  %v3061_v55 = vadd.f32 %v5065_v27, %v3060_v58 }
 0xa25   : > { %v3115_v43 = vmax.f32 %v5072_v5, 0.0 }
 0xa2a   : > { %v3079_v7 = vpop.f32.mrf.mxu1 }
 0xa2b   : > { %v5076_v39 = vadd.f32 %v3079_v7, %v3031_v62 }
 0xa2d   : > { %v3116_v15 = vmax.f32 %v5076_v39, 0.0 }
 0xa32   : > { %v3081_v9 = vpop.f32.mrf.mxu1 }
 0xa33   : > { %v5080_v0 = vadd.f32 %v3081_v9, %v3033_v44  ;;  %v3062_v44 = vpop.f32.mrf.mxu0 }
 0xa34   : > { %v3063_v9 = vadd.f32 %v5065_v27, %v3062_v44 }
 0xa35   : > { %v3117_v32 = vmax.f32 %v5080_v0, 0.0 }
 0xa3a   : > { %v3084_v8 = vpop.f32.mrf.mxu1 }
 0xa3b   : > { %v5084_v35 = vadd.f32 %v3084_v8, %v3036_v17 }
 0xa3d   : > { %v3118_v25 = vmax.f32 %v5084_v35, 0.0 }
 0xa42   : > { %v3086_v4 = vpop.f32.mrf.mxu1 }
 0xa43   : > { %v5088_v56 = vadd.f32 %v3086_v4, %v3038_v31 }
 0xa45   : > { %v3119_v14 = vmax.f32 %v5088_v56, 0.0 }
 0xa4a   : > { %v3089_v34 = vpop.f32.mrf.mxu1 }
 0xa4b   : > { %v5092_v21 = vadd.f32 %v3089_v34, %v3041_v12 }
 0xa4d   : > { %v3120_v48 = vmax.f32 %v5092_v21, 0.0 }
 0xa52   : > { %v3091_v33 = vpop.f32.mrf.mxu1 }
 0xa53   : > { %v5096_v3 = vadd.f32 %v3091_v33, %v3043_v20 }
 0xa55   : > { %v3121_v57 = vmax.f32 %v5096_v3, 0.0 }
 0xa5a   : > { %v3094_v49 = vpop.f32.mrf.mxu1 }
 0xa5b   : > { %v5100_v42 = vadd.f32 %v3094_v49, %v3046_v29 }
 0xa5d   : > { %v3122_v24 = vmax.f32 %v5100_v42, 0.0 }
 0xa62   : > { %v3096_v41 = vpop.f32.mrf.mxu1 }
 0xa63   : > { %v5104_v19 = vadd.f32 %v3096_v41, %v3048_v46 }
 0xa65   : > { %v3123_v26 = vmax.f32 %v5104_v19, 0.0 }
 0xa6a   : > { %v3099_v13 = vpop.f32.mrf.mxu1 }
 0xa6b   : > { %v5108_v30 = vadd.f32 %v3099_v13, %v3051_v37 }
 0xa6d   : > { %v3124_v28 = vmax.f32 %v5108_v30, 0.0 }
 0xa72   : > { %v3101_v45 = vpop.f32.mrf.mxu1 }
 0xa73   : > { %v5112_v60 = vadd.f32 %v3101_v45, %v3053_v36 }
 0xa75   : > { %v3125_v54 = vmax.f32 %v5112_v60, 0.0 }
 0xa7a   : > { %v3104_v6 = vpop.f32.mrf.mxu1 }
 0xa7b   : > { %v5116_v61 = vadd.f32 %v3104_v6, %v3056_v1 }
 0xa7d   : > { %v3126_v53 = vmax.f32 %v5116_v61, 0.0 }
 0xa82   : > { %v3106_v10 = vpop.f32.mrf.mxu1 }
 0xa83   : > { %v5120_v18 = vadd.f32 %v3106_v10, %v3058_v47 }
 0xa85   : > { %v3127_v51 = vmax.f32 %v5120_v18, 0.0 }
 0xa8a   : > { %v3109_v62 = vpop.f32.mrf.mxu1 }
 0xa8b   : > { %v5124_v22 = vadd.f32 %v3109_v62, %v3061_v55 }
 0xa8d   : > { %v3128_v7 = vmax.f32 %v5124_v22, 0.0 }
 0xa91   : > { %3132 = sbr.rel (%p3245_p4) target bundleno = 2727 (0xaa7), region = 60 }
 0xa92   : > { %v3111_v11 = vpop.f32.mrf.mxu1 }
 0xa93   : > { %v5128_v17 = vadd.f32 %v3111_v11, %v3063_v9 }
 0xa95   : > { %v3129_v8 = vmax.f32 %v5128_v17, 0.0 }
 0xa96   : > { %v4188_v50 = vmov 0.0  }
 0xa97   : > { %3133 = vst [vmem:[%s5320_s8] sm:$0xff] %v4188_v50 }
 0xa98   : > { %3134 = vst [vmem:[%s5320_s8 + $0x8] sm:$0xff] %v4188_v50 }
 0xa99   : > { %3135 = vst [vmem:[%s5320_s8 + $0x10] sm:$0xff] %v4188_v50 }
 0xa9a   : > { %3136 = vst [vmem:[%s5320_s8 + $0x18] sm:$0xff] %v4188_v50 }
 0xa9b   : > { %3137 = vst [vmem:[%s5320_s8 + $0x20] sm:$0xff] %v4188_v50 }
 0xa9c   : > { %3138 = vst [vmem:[%s5320_s8 + $0x28] sm:$0xff] %v4188_v50 }
 0xa9d   : > { %3139 = vst [vmem:[%s5320_s8 + $0x30] sm:$0xff] %v4188_v50 }
 0xa9e   : > { %3140 = vst [vmem:[%s5320_s8 + $0x38] sm:$0xff] %v4188_v50 }
 0xa9f   : > { %3141 = vst [vmem:[%s5320_s8 + $0x40] sm:$0xff] %v4188_v50 }
 0xaa0   : > { %3142 = vst [vmem:[%s5320_s8 + $0x48] sm:$0xff] %v4188_v50 }
 0xaa1   : > { %3143 = vst [vmem:[%s5320_s8 + $0x50] sm:$0xff] %v4188_v50 }
 0xaa2   : > { %3144 = vst [vmem:[%s5320_s8 + $0x58] sm:$0xff] %v4188_v50 }
 0xaa3   : > { %3145 = vst [vmem:[%s5320_s8 + $0x60] sm:$0xff] %v4188_v50 }
 0xaa4   : > { %3146 = vst [vmem:[%s5320_s8 + $0x68] sm:$0xff] %v4188_v50 }
 0xaa5   : > { %3147 = vst [vmem:[%s5320_s8 + $0x70] sm:$0xff] %v4188_v50 }
 0xaa6   : > { %3148 = vst [vmem:[%s5320_s8 + $0x78] sm:$0xff] %v4188_v50 }
 0xaa7 PF: > { %v3149_v27 = vld [vmem:[%s5320_s8] sm:$0xff]  ;;  %v3150_v31 = vld [vmem:[%s5320_s8 + $0x8] sm:$0xff]  ;;  %v3151_v4 = vld [vmem:[%s5320_s8 + $0x10] sm:$0xff] }
 0xaa8   : > { %v3165_v23 = vadd.f32 %v3149_v27, %v3114_v52  ;;  %v3166_v12 = vadd.f32 %v3150_v31, %v3115_v43  ;;  %v3167_v34 = vadd.f32 %v3151_v4, %v3116_v15  ;;  %v3152_v20 = vld [vmem:[%s5320_s8 + $0x18] sm:$0xff]  ;;  %v3153_v59 = vld [vmem:[%s5320_s8 + $0x20] sm:$0xff]  ;;  %v3154_v33 = vld [vmem:[%s5320_s8 + $0x28] sm:$0xff] }
 0xaa9   : > { %v3168_v40 = vadd.f32 %v3152_v20, %v3117_v32  ;;  %v3155_v52 = vld [vmem:[%s5320_s8 + $0x30] sm:$0xff]  ;;  %v3169_v5 = vadd.f32 %v3153_v59, %v3118_v25  ;;  %v3156_v43 = vld [vmem:[%s5320_s8 + $0x38] sm:$0xff]  ;;  %v3170_v39 = vadd.f32 %v3154_v33, %v3119_v14  ;;  %v3157_v15 = vld [vmem:[%s5320_s8 + $0x40] sm:$0xff] }
 0xaaa   : > { %3181 = vst [vmem:[%s5320_s8] sm:$0xff] %v3165_v23  ;;  %v3171_v0 = vadd.f32 %v3155_v52, %v3120_v48  ;;  %v3158_v32 = vld [vmem:[%s5320_s8 + $0x48] sm:$0xff]  ;;  %v3172_v35 = vadd.f32 %v3156_v43, %v3121_v57  ;;  %v3159_v25 = vld [vmem:[%s5320_s8 + $0x50] sm:$0xff]  ;;  %v3173_v56 = vadd.f32 %v3157_v15, %v3122_v24  ;;  %v3160_v14 = vld [vmem:[%s5320_s8 + $0x58] sm:$0xff] }
 0xaab   : > { %3182 = vst [vmem:[%s5320_s8 + $0x8] sm:$0xff] %v3166_v12  ;;  %v3174_v21 = vadd.f32 %v3158_v32, %v3123_v26  ;;  %v3161_v48 = vld [vmem:[%s5320_s8 + $0x60] sm:$0xff]  ;;  %v3175_v3 = vadd.f32 %v3159_v25, %v3124_v28  ;;  %v3162_v57 = vld [vmem:[%s5320_s8 + $0x68] sm:$0xff]  ;;  %v3176_v29 = vadd.f32 %v3160_v14, %v3125_v54 }
 0xaac   : > { %3183 = vst [vmem:[%s5320_s8 + $0x10] sm:$0xff] %v3167_v34  ;;  %v3163_v49 = vld [vmem:[%s5320_s8 + $0x70] sm:$0xff]  ;;  %v3177_v42 = vadd.f32 %v3161_v48, %v3126_v53  ;;  %v3178_v24 = vadd.f32 %v3162_v57, %v3127_v51 }
 0xaad   : > { %3184 = vst [vmem:[%s5320_s8 + $0x18] sm:$0xff] %v3168_v40  ;;  %v3164_v2 = vld [vmem:[%s5320_s8 + $0x78] sm:$0xff]  ;;  %v3179_v46 = vadd.f32 %v3163_v49, %v3128_v7 }
 0xaae   : > { %3185 = vst [vmem:[%s5320_s8 + $0x20] sm:$0xff] %v3169_v5  ;;  %v3180_v41 = vadd.f32 %v3164_v2, %v3129_v8 }
 0xaaf   : > { %3186 = vst [vmem:[%s5320_s8 + $0x28] sm:$0xff] %v3170_v39 }
 0xab0   : > { %3187 = vst [vmem:[%s5320_s8 + $0x30] sm:$0xff] %v3171_v0 }
 0xab1   : > { %3188 = vst [vmem:[%s5320_s8 + $0x38] sm:$0xff] %v3172_v35 }
 0xab2   : > { %3189 = vst [vmem:[%s5320_s8 + $0x40] sm:$0xff] %v3173_v56 }
 0xab3   : > { %3190 = vst [vmem:[%s5320_s8 + $0x48] sm:$0xff] %v3174_v21 }
 0xab4   : > { %3191 = vst [vmem:[%s5320_s8 + $0x50] sm:$0xff] %v3175_v3 }
 0xab5   : > { %3192 = vst [vmem:[%s5320_s8 + $0x58] sm:$0xff] %v3176_v29 }
 0xab6   : > { %3193 = vst [vmem:[%s5320_s8 + $0x60] sm:$0xff] %v3177_v42 }
 0xab7   : > { %3194 = vst [vmem:[%s5320_s8 + $0x68] sm:$0xff] %v3178_v24 }
 0xab8   : > { %3195 = vst [vmem:[%s5320_s8 + $0x70] sm:$0xff] %v3179_v46 }
 0xab9   : > { %3196 = vst [vmem:[%s5320_s8 + $0x78] sm:$0xff] %v3180_v41 }
 0xaba PF: > { %s18_s27 = sadd.s32 1, %s4184_s27  }
 0xabb   : > { %p15_p5 = scmp.ge.s32.totalorder %s18_s27, 4  }
 0xabd   :  { %17 = sbr.rel (!%p15_p5) target bundleno = 1 (0x1), region = 97 }

</bundles_post_ra>
